<compile_context>
chip_gen: v5e
topology: v5e:2x2
jax: 0.10.0
libtpu: 0.0.40
codegen_flags: <defaults>
</compile_context>

<pallas_src>
import functools

import jax
import jax.numpy as jnp
from jax import lax
from jax.experimental import pallas as pl
from jax.experimental.pallas import tpu as pltpu


def _round_up(x, m):
    return (x + m - 1) // m * m


def _memory_forward_kernel(x_ref, cache_t_ref, w1_ref, wf_ref, out_ref, *, n_mem):
    # x_ref:       (TC, d)      block of text tokens (input dtype)
    # cache_t_ref: (d,  M_pad)  cache.T, zero-padded columns   (resident)
    # w1_ref:      (d,  d)      alpha * W_text + I             (resident)
    # wf_ref:      (M_pad, d)   alpha * (cache @ W_fine), zero-padded rows (resident)
    # out_ref:     (TC, d)
    x = x_ref[...]

    # score = x @ cache.T  -> lane-dense (TC, M_pad), f32 accumulation on the MXU.
    score = jnp.dot(x, cache_t_ref[...], preferred_element_type=jnp.float32)

    # Mask the zero-padded memory columns before softmax.
    col = lax.broadcasted_iota(jnp.int32, score.shape, 1)
    score = jnp.where(col < n_mem, score, -jnp.inf)

    # Softmax over the memory axis (f32 VPU/EUP math; p rows discarded for any
    # out-of-bounds rows of a ragged last block are never stored).
    score = score - jnp.max(score, axis=-1, keepdims=True)
    e = jnp.exp(score)
    p = e * pl.reciprocal(jnp.sum(e, axis=-1, keepdims=True), approx=False)

    # out = x @ (alpha*W_text + I) + p @ (alpha * cache @ W_fine)
    #     == alpha * extractor(cat([x, p @ cache], -1)) + x
    out = jnp.dot(x, w1_ref[...], preferred_element_type=jnp.float32)
    out = out + jnp.dot(p.astype(wf_ref.dtype), wf_ref[...],
                        preferred_element_type=jnp.float32)
    out_ref[...] = out.astype(out_ref.dtype)


def prepare_memory_params(cache, extractor_weight, *, alpha=0.2, param_dtype=None):
    """One-time constant preparation (hoisted out of the per-call hot path)."""
    M, d = cache.shape
    assert extractor_weight.shape == (d, 2 * d), extractor_weight.shape
    if param_dtype is None:
        param_dtype = cache.dtype

    m_pad = max(_round_up(M, 128), 128)           # lane-dense memory axis
    cache32 = cache.astype(jnp.float32)
    w_text = extractor_weight[:, :d].astype(jnp.float32).T   # (d, d)
    w_fine = extractor_weight[:, d:].astype(jnp.float32).T   # (d, d)

    # Fold alpha and the residual into the constants (tiny one-time transforms).
    w1 = alpha * w_text + jnp.eye(d, dtype=jnp.float32)       # (d, d)
    wf = alpha * (cache32 @ w_fine)                           # (M, d)
    wf = jnp.pad(wf, ((0, m_pad - M), (0, 0)))                # zero rows for pad
    cache_t = jnp.pad(cache32.T, ((0, 0), (0, m_pad - M)))    # (d, M_pad)

    return {
        "cache_t": cache_t.astype(param_dtype),
        "w1": w1.astype(param_dtype),
        "wf": wf.astype(param_dtype),
        "n_mem": int(M),
        "alpha": float(alpha),
    }


def _choose_block_c(C, block_c):
    if C <= 8:
        return C          # single block equal to the full class dim is legal
    if C <= block_c:
        # Split into (at least) two blocks so v7x's two TensorCores both get
        # work; round to the sublane multiple so the ragged last block stays
        # (8, 128)-legal.
        return min(C, _round_up(-(-C // 2), 8))
    return block_c


def memory_read_extract(text_token, params, *, block_c=128):
    """Fused read() + extractor projection (eval-mode Memory.forward output)."""
    C, d = text_token.shape
    cache_t, w1, wf = params["cache_t"], params["w1"], params["wf"]
    m_pad = cache_t.shape[1]
    assert cache_t.shape[0] == d and w1.shape == (d, d) and wf.shape == (m_pad, d)

    bc = _choose_block_c(C, block_c)
    n_blocks = pl.cdiv(C, bc)

    nbytes = jnp.dtype(text_token.dtype).itemsize
    cost = pl.CostEstimate(
        flops=2 * C * d * (2 * m_pad + d),
        transcendentals=C * m_pad,
        bytes_accessed=(2 * C * d + d * m_pad + d * d + m_pad * d) * nbytes,
    )

    # NOTE: at d >= 1024 on v7x, pass params in bf16 or raise vmem_limit_bytes
    # (resident (d,d)/(d,M_pad) buffers are still double-buffered by default).
    return pl.pallas_call(
        functools.partial(_memory_forward_kernel, n_mem=params["n_mem"]),
        out_shape=jax.ShapeDtypeStruct((C, d), text_token.dtype),
        grid_spec=pltpu.PrefetchScalarGridSpec(
            num_scalar_prefetch=0,
            grid=(n_blocks,),
            in_specs=[
                pl.BlockSpec((bc, d), lambda i: (i, 0)),
                pl.BlockSpec((d, m_pad), lambda i: (0, 0)),   # resident
                pl.BlockSpec((d, d), lambda i: (0, 0)),       # resident
                pl.BlockSpec((m_pad, d), lambda i: (0, 0)),   # resident
            ],
            out_specs=pl.BlockSpec((bc, d), lambda i: (i, 0)),
        ),
        compiler_params=pltpu.CompilerParams(
            dimension_semantics=("parallel",)),
        cost_estimate=cost,
    )(text_token, cache_t, w1, wf)


def memory_write(image_token, cache, *, momentum=0.8):
    """Pure-JAX port of Memory.write (training-time cache update).

    Stateful, data-dependent scatter-by-argmax over only `memory_size` rows;
    kept in plain XLA — the caller threads the new cache.
    """
    m, d = cache.shape
    base = image_token.reshape(-1, d).astype(jnp.float32)
    base = base / jnp.linalg.norm(base, axis=-1, keepdims=True)
    cache32 = cache.astype(jnp.float32)

    score = base @ cache32.T                               # (N, m)
    score_query = jax.nn.softmax(score, axis=0)
    score_cache = jax.nn.softmax(score, axis=1)
    upd_idx = jnp.argmax(score_cache, axis=1)              # topk(k=1)
    onehot = upd_idx[:, None] == jnp.arange(m)[None, :]    # (N, m)
    col_max = jnp.max(score_query, axis=0)                 # (m,)
    w = jnp.where(onehot, score_query / col_max[None, :], 0.0)
    contrib = w.T @ base                                   # (m, d)
    hit = jnp.any(onehot, axis=0)
    updated = jnp.where(hit[:, None],
                        momentum * cache32 + (1.0 - momentum) * contrib,
                        cache32)
    updated = updated / jnp.linalg.norm(updated, axis=-1, keepdims=True)
    return updated.astype(cache.dtype)


def memory_forward(text_token, image_token=None, *, cache, params,
                   momentum=0.8, training=False, block_c=128):
    """Functional Memory.forward.  Returns (text_fine_feature, loss, new_cache)."""
    out = memory_read_extract(text_token, params, block_c=block_c)
    if training:
        new_cache = memory_write(image_token, cache, momentum=momentum)
        norm = out.astype(jnp.float32)
        norm = norm / jnp.linalg.norm(norm, axis=-1, keepdims=True)
        loss = jnp.mean(jnp.abs(norm.astype(out.dtype) - text_token))
    else:
        new_cache = cache
        loss = 0.0
    return out, loss, new_cache


if __name__ == "__main__":
    # Deterministic config consistent with Memory(feature_dim=512, memory_size=25).
    n_cls = 16
    feature_dim = 512
    memory_size = 25
    alpha = 0.2
    dtype = jnp.float32

    key = jax.random.PRNGKey(0)
    k_cache, k_txt, k_img, k_w = jax.random.split(key, 4)

    # text_fine_cache = F.normalize(rand(M, d), dim=-1)
    cache = jax.random.uniform(k_cache, (memory_size, feature_dim), dtype=jnp.float32)
    cache = (cache / jnp.linalg.norm(cache, axis=-1, keepdims=True)).astype(dtype)

    text_token = jax.random.normal(k_txt, (n_cls, feature_dim)).astype(dtype)
    image_token = jax.random.normal(k_img, (n_cls, feature_dim)).astype(dtype)

    # extractor = nn.Linear(2d, d, bias=False): weight shape (d, 2d)
    bound = 1.0 / jnp.sqrt(2.0 * feature_dim)
    extractor_weight = jax.random.uniform(
        k_w, (feature_dim, 2 * feature_dim), minval=-bound, maxval=bound
    ).astype(dtype)

    # One-time constant preparation (hoisted out of the hot path).
    params = prepare_memory_params(cache, extractor_weight, alpha=alpha,
                                   param_dtype=dtype)

    # Eval forward through the Pallas kernel.
    out, loss, new_cache = memory_forward(
        text_token, cache=cache, params=params, training=False)
    out = jax.block_until_ready(out)

    # Pure-JAX reference of Memory.forward (eval path).
    hi = lax.Precision.HIGHEST
    score = jnp.dot(text_token, cache.T, precision=hi)
    p_ref = jax.nn.softmax(score, axis=1)
    fine_ref = jnp.dot(p_ref, cache, precision=hi)
    cat_ref = jnp.concatenate([text_token, fine_ref], axis=-1)
    ref = alpha * jnp.dot(cat_ref, extractor_weight.T, precision=hi) + text_token

    assert out.shape == (n_cls, feature_dim), out.shape
    assert out.dtype == dtype, out.dtype
    max_err = float(jnp.max(jnp.abs(out - ref)))
    assert jnp.allclose(out, ref, atol=1e-3, rtol=1e-3), f"mismatch vs reference: {max_err}"
    assert loss == 0.0 and new_cache is cache

    # Exercise the training path once (write() + L1 loss) to make sure it runs.
    out_tr, loss_tr, cache_tr = memory_forward(
        text_token, image_token, cache=cache, params=params, training=True)
    out_tr, loss_tr, cache_tr = jax.block_until_ready((out_tr, loss_tr, cache_tr))
    assert jnp.isfinite(loss_tr)
    assert cache_tr.shape == cache.shape
    # TODO(synk): write()'s per-slot scatter-by-argmax update stays in plain JAX
    # (stateful, data-dependent indexing over only `memory_size` rows — no Pallas win).

    print("KERNEL_OK")
</pallas_src>

<mosaic_0001>
module attributes {stable_mosaic.version = 11 : i64} {
  func.func @_memory_forward_kernel(%arg0: i32, %arg1: memref<8x512xf32, #tpu.memory_space<vmem>>, %arg2: memref<512x128xf32, #tpu.memory_space<vmem>>, %arg3: memref<512x512xf32, #tpu.memory_space<vmem>>, %arg4: memref<128x512xf32, #tpu.memory_space<vmem>>, %arg5: memref<8x512xf32, #tpu.memory_space<vmem>>) attributes {dimension_semantics = [#tpu.dimension_semantics<parallel>], iteration_bounds = array<i64: 2>, scalar_prefetch = 0 : i64, scratch_operands = 0 : i64, tpu.core_type = #tpu.core_type<tc>, window_params = [{transform_indices = @transform_0, window_bounds = array<i64: 8, 512>}, {pipeline_mode = #tpu.pipeline_mode<synchronous>, transform_indices = @transform_1, window_bounds = array<i64: 512, 128>}, {pipeline_mode = #tpu.pipeline_mode<synchronous>, transform_indices = @transform_2, window_bounds = array<i64: 512, 512>}, {pipeline_mode = #tpu.pipeline_mode<synchronous>, transform_indices = @transform_3, window_bounds = array<i64: 128, 512>}, {transform_indices = @transform_4, window_bounds = array<i64: 8, 512>}]} {
    %c0 = arith.constant 0 : index
    %c0_0 = arith.constant 0 : index
    %0 = vector.load %arg1[%c0, %c0_0] : memref<8x512xf32, #tpu.memory_space<vmem>>, vector<8x512xf32>
    %c0_1 = arith.constant 0 : index
    %c0_2 = arith.constant 0 : index
    %1 = vector.load %arg2[%c0_1, %c0_2] : memref<512x128xf32, #tpu.memory_space<vmem>>, vector<512x128xf32>
    %cst = arith.constant dense<0.000000e+00> : vector<8x128xf32>
    %2 = tpu.matmul %0, %1, %cst {dimension_numbers = #tpu.dot_dimension_numbers<[1], [0], [0], [1], [0, 0, 1, 1], [], []>} : vector<8x512xf32>, vector<512x128xf32>, vector<8x128xf32> -> vector<8x128xf32>
    %3 = tpu.iota {dimensions = array<i32: 1>} : vector<8x128xi32>
    %c25_i32 = arith.constant 25 : i32
    %4 = vector.broadcast %c25_i32 : i32 to vector<8x128xi32>
    %5 = arith.cmpi slt, %3, %4 : vector<8x128xi32>
    %cst_3 = arith.constant 0xFF800000 : f32
    %6 = vector.broadcast %cst_3 : f32 to vector<8x128xf32>
    %7 = arith.select %5, %2, %6 : vector<8x128xi1>, vector<8x128xf32>
    %cst_4 = arith.constant dense<0xFF800000> : vector<8xf32>
    %8 = vector.multi_reduction <maximumf>, %7, %cst_4 [1] : vector<8x128xf32> to vector<8xf32>
    %9 = vector.shape_cast %8 : vector<8xf32> to vector<8x1xf32>
    %10 = vector.broadcast %9 : vector<8x1xf32> to vector<8x128xf32>
    %11 = arith.subf %7, %10 : vector<8x128xf32>
    %12 = math.exp %11 : vector<8x128xf32>
    %cst_5 = arith.constant dense<0.000000e+00> : vector<8xf32>
    %13 = vector.multi_reduction <add>, %12, %cst_5 [1] : vector<8x128xf32> to vector<8xf32>
    %14 = vector.shape_cast %13 : vector<8xf32> to vector<8x1xf32>
    %15 = tpu.reciprocal %14 : vector<8x1xf32> -> vector<8x1xf32>
    %16 = vector.broadcast %15 : vector<8x1xf32> to vector<8x128xf32>
    %17 = arith.mulf %12, %16 : vector<8x128xf32>
    %c0_6 = arith.constant 0 : index
    %c0_7 = arith.constant 0 : index
    %18 = vector.load %arg3[%c0_6, %c0_7] : memref<512x512xf32, #tpu.memory_space<vmem>>, vector<512x512xf32>
    %cst_8 = arith.constant dense<0.000000e+00> : vector<8x512xf32>
    %19 = tpu.matmul %0, %18, %cst_8 {dimension_numbers = #tpu.dot_dimension_numbers<[1], [0], [0], [1], [0, 0, 1, 1], [], []>} : vector<8x512xf32>, vector<512x512xf32>, vector<8x512xf32> -> vector<8x512xf32>
    %c0_9 = arith.constant 0 : index
    %c0_10 = arith.constant 0 : index
    %20 = vector.load %arg4[%c0_9, %c0_10] : memref<128x512xf32, #tpu.memory_space<vmem>>, vector<128x512xf32>
    %cst_11 = arith.constant dense<0.000000e+00> : vector<8x512xf32>
    %21 = tpu.matmul %17, %20, %cst_11 {dimension_numbers = #tpu.dot_dimension_numbers<[1], [0], [0], [1], [0, 0, 1, 1], [], []>} : vector<8x128xf32>, vector<128x512xf32>, vector<8x512xf32> -> vector<8x512xf32>
    %22 = arith.addf %19, %21 : vector<8x512xf32>
    %c0_12 = arith.constant 0 : index
    %c0_13 = arith.constant 0 : index
    %23 = vector.load %arg5[%c0_12, %c0_13] : memref<8x512xf32, #tpu.memory_space<vmem>>, vector<8x512xf32>
    tpu.vector_store %arg5[%c0_12, %c0_13], %22 {strides = array<i32>} : memref<8x512xf32, #tpu.memory_space<vmem>>, vector<8x512xf32>,
    return
  }
  func.func @transform_0(%arg0: i32) -> (i32, i32) {
    %c0_i32 = arith.constant 0 : i32
    %c0_i32_0 = arith.constant 0 : i32
    return %arg0, %c0_i32 : i32, i32
  }
  func.func @transform_1(%arg0: i32) -> (i32, i32) {
    %c0_i32 = arith.constant 0 : i32
    %c0_i32_0 = arith.constant 0 : i32
    %c0_i32_1 = arith.constant 0 : i32
    return %c0_i32, %c0_i32_0 : i32, i32
  }
  func.func @transform_2(%arg0: i32) -> (i32, i32) {
    %c0_i32 = arith.constant 0 : i32
    %c0_i32_0 = arith.constant 0 : i32
    %c0_i32_1 = arith.constant 0 : i32
    return %c0_i32, %c0_i32_0 : i32, i32
  }
  func.func @transform_3(%arg0: i32) -> (i32, i32) {
    %c0_i32 = arith.constant 0 : i32
    %c0_i32_0 = arith.constant 0 : i32
    %c0_i32_1 = arith.constant 0 : i32
    return %c0_i32, %c0_i32_0 : i32, i32
  }
  func.func @transform_4(%arg0: i32) -> (i32, i32) {
    %c0_i32 = arith.constant 0 : i32
    %c0_i32_0 = arith.constant 0 : i32
    return %arg0, %c0_i32 : i32, i32
  }
}

</mosaic_0001>

<bundles_post_ra>
// kernel: tpu_custom_call.1
= control target key start
LH: loop header
LB: loop body
LE: loop exit
PB: predicated region body
PF: predicated region fallthrough
CT: control target
= control target key end

     0   :  { %9 = vsyncpa [#allocation3], 0  ;;  %s1840_s0 = inlined_call_operand.hbm [shape: f32[16,512], index: 0, kind: input, shape index: {}]   ;;  %s1841_s1 = inlined_call_operand.hbm [shape: f32[512,128], index: 1, kind: input, shape index: {}]   ;;  %s1842_s2 = inlined_call_operand.hbm [shape: f32[512,512], index: 2, kind: input, shape index: {}]   ;;  %s1843_s3 = inlined_call_operand.hbm [shape: f32[128,512], index: 3, kind: input, shape index: {}]   ;;  %s1844_s4 = inlined_call_operand.hbm [shape: f32[16,512], index: 4, kind: output, shape index: {}]  }
   0x1   :  { %11 = vsyncpa [#allocation3 + $0x1], 0 }
   0x2   :  { %12 = vsyncpa [#allocation6], 0 }
   0x3   :  { %13 = vsyncpa [#allocation9], 0 }
   0x4   :  { %14 = vsyncpa [#allocation4], 0 }
   0x5   :  { %16 = vsyncpa [#allocation4 + $0x1], 0  ;;  %s1619_s15 = smov 0   ;;  %s1621_s16 = smov 0  }
   0x6   :  { %s1623_s17 = smov 0   ;;  %s1625_s18 = smov 0  }
   0x7 LB: > { %s153_s21 = sshll.u32 %s1841_s1, 4  ;;  %s1643_s22 = sadd.s32 4294967295, %s1585_s18   ;;  %s1585_s18 = sphi %s1625_s18, %s1855_s18   ;;  %s1581_s17 = sphi %s1623_s17, %s1854_s17   ;;  %s1577_s16 = sphi %s1621_s16, %s1853_s16   ;;  %s1573_s15 = sphi %s1619_s15, %s1852_s15   ;;  %s154_s21 = int_to_ptr.hbm [resolvable:$true] %s153_s21 }
   0x8   : > { %p1281_p0 = scmp.ge.s32.totalorder %s1585_s18, 1  ;;  %p43_p1 = scmp.eq.s32.totalorder %s1643_s22, 0 }
   0x9   : > { %p142_p2 = scmp.lt.s32.totalorder %s1585_s18, 3  ;;  %s1587_s24 = smov [#allocation5]  }
   0xa   : > { %s155_s25 = sshll.u32 %s1587_s24, 4  ;;  %s167_s28 = sshll.u32 %s1842_s2, 4  ;;  %s156_s25 = int_to_ptr.vmem [resolvable:$true] %s155_s25  ;;  %s168_s28 = int_to_ptr.hbm [resolvable:$true] %s167_s28 }
   0xb   : > { %p1648_p3 = pnand %p1281_p0, %p142_p2  ;;  %s1588_s30 = smov [#allocation7]  }
   0xc   : > { %s169_s5 = sshll.u32 %s1588_s30, 4  ;;  %s1589_s6 = smov 128   ;;  %s170_s5 = int_to_ptr.vmem [resolvable:$true] %s169_s5 }
   0xd   : > { %p1318_p4 = pneg %p1648_p3  ;;  %s1590_s7 = smov 8  }
   0xe   : > { %s1591_s8 = smov 512   ;;  %s1592_s9 = smov 32  }
   0xf   : > { %p1660_p6 = pnand %p1318_p4, %p43_p1  ;;  %s181_s12 = sshll.u32 %s1843_s3, 4  ;;  %s182_s12 = int_to_ptr.hbm [resolvable:$true] %s181_s12 }
  0x10   : > { %s1593_s13 = smov [#allocation8]   ;;  %s1280_s19 = sadd.s32 4294967294, %s1585_s18  }
  0x11   : > { %1321 = dma.hbm_to_vmem [thread:$0]  (!%p1660_p6), %s154_s21, 8192, %s156_s25, [#allocation6], %s1589_s6, %s1589_s6, %s1590_s7  }
  0x12   : > { %1324 = dma.hbm_to_vmem [thread:$0]  (!%p1660_p6), %s168_s28, 32768, %s170_s5, [#allocation6], %s1591_s8, %s1591_s8, %s1592_s9  }
  0x13   : > { %s183_s14 = sshll.u32 %s1593_s13, 4  ;;  %s1675_s20 = sadd.s32 1, %s1585_s18   ;;  %s184_s14 = int_to_ptr.vmem [resolvable:$true] %s183_s14 }
  0x14   : > { %1327 = dma.hbm_to_vmem [thread:$0]  (!%p1660_p6), %s182_s12, 8192, %s184_s14, [#allocation9], %s1591_s8, %s1591_s8, %s1592_s9  }
  0x15   : > { %s29_s21 = sadd.s32 1, %s1581_s17  ;;  %s26_s24 = ssub.s32 %s1585_s18, %s1675_s20 }
  0x16   : > { %p36_p7 = scmp.ne.s32.totalorder %s1581_s17, %s1577_s16  ;;  %p27_p8 = scmp.eq.s32.totalorder %s26_s24, 0 }
  0x17   : > { %p37_p9 = scmp.eq.s32.totalorder %s1585_s18, 0  ;;  %p42_p10 = scmp.ne.s32.totalorder %s1577_s16, %s1573_s15 }
  0x18   : > { %p129_p11 = scmp.eq.s32.totalorder %s1643_s22, 1  ;;  %p135_p0 = scmp.eq.s32.totalorder %s1280_s19, 1 }
  0x19   : > { %s1687_s25 = scalar_select %p27_p8, %s1581_s17, %s29_s21  }
  0x1a   : > { %p1691_p12 = por %p43_p1, %p42_p10  ;;  %p1695_p13 = por %p129_p11, %p36_p7 }
  0x1b   : > { %p38_p2 = por %p37_p9, %p36_p7  ;;  %s197_s28 = sand.u32 1, %s1581_s17  }
  0x1c   : > { %p1700_p4 = por %p135_p0, %p42_p10  ;;  %p1339_p6 = scmp.lt.s32.totalorder %s1585_s18, 2 }
  0x1d   : > { %s1286_s30 = sshll.u32 %s197_s28, 5  ;;  %s1300_s5 = sshll.u32 %s1585_s18, 5 }
  0x1e   : > { %s206_s8 = scalar_lea.hbm %s1840_s0, %s1300_s5  ;;  %s201_s10 = scalar_lea.vmem [#allocation2], %s1286_s30 }
  0x1f   : > { %s208_s9 = sshll.u32 %s206_s8, 4  ;;  %s210_s11 = sshll.u32 %s201_s10, 4  ;;  %s209_s9 = int_to_ptr.hbm [resolvable:$true] %s208_s9  ;;  %s211_s11 = int_to_ptr.vmem [resolvable:$true] %s210_s11 }
  0x20   : > { %p1709_p8 = pnand %p1339_p6, %p38_p2  ;;  %s198_s13 = scalar_lea.sflag [#allocation3], %s197_s28 }
  0x21   : > { %s1481_s14 = sshra.s32 %s209_s9, 4  ;;  %s1488_s30 = scalar_lea.hbm %s1840_s0, 64  ;;  %s1482_s14 = int_to_ptr.hbm [resolvable:$true] %s1481_s14 }
  0x22   : > { %s1483_s19 = scalar_lea.hbm %s1482_s14, 32  ;;  %p1485_p9 = pneg %p1709_p8 }
  0x23   : > { %p1484_p7 = scmp.ne.s32.totalorder %s1482_s14, %s1483_s19  ;;  %p1489_p0 = scmp.lt.s32.totalorder %s1482_s14, %s1840_s0 }
  0x24   : > { %p1490_p2 = scmp.lt.s32.totalorder %s1488_s30, %s1483_s19 }
  0x25   : > { %p1486_p10 = pnand %p1485_p9, %p1484_p7 }
  0x26   : > { %p1491_p6 = por %p1490_p2, %p1489_p0 }
  0x27   : > { %p1487_p11 = pneg %p1486_p10 }
  0x29   : > { %p1492_p5 = pnand %p1491_p6, %p1487_p11 }
  0x2b   : > { %1495 = shalt.err (!%p1492_p5)
}
  0x2c   : > { %1331 = dma.hbm_to_vmem [thread:$0]  (!%p1709_p8), %s209_s9, 512, %s211_s11, %s198_s13  }
  0x2d   : > { %219 = sbr.rel (%p1648_p3) target bundleno = 729 (0x2d9), region = 36  ;;  %s1726_s28 = sand.u32 (!%p1648_p3), 1, %s1577_s16  }
  0x2e   : > { %s1290_s7 = sshll.u32 (!%p1648_p3), %s1726_s28, 5  ;;  %s222_s8 = scalar_lea.sflag (!%p1648_p3), [#allocation3], %s1726_s28 }
  0x2f   : > { %s1732_s10 = scalar_lea.vmem (!%p1648_p3), [#allocation2], %s1290_s7 }
  0x32   : > { %1556 = dma.done.wait (%p1691_p12), %s222_s8, 512  }
  0x33   : > { %1558 = vsyncadd (%p1691_p12), %s222_s8, 4294966784 }
  0x34   : > { %1560 = dma.done.wait (%p43_p1), [#allocation6], 40960  }
  0x35   : > { %1562 = vsyncadd (%p43_p1), [#allocation6], 4294926336 }
  0x36   : > { %1564 = dma.done.wait (%p43_p1), [#allocation9], 8192  }
  0x37   : > { %1566 = vsyncadd (%p43_p1), [#allocation9], 4294959104  ;;  %v317_v0 = vld [vmem:[#allocation5 + $0x178] sm:$0xff]  ;;  %v316_v1 = vld [vmem:[#allocation5 + $0x170] sm:$0xff]  ;;  %s1800_s23 = scalar_lea.vmem [#allocation10], %s1290_s7  ;;  %s1301_s26 = sshll.u32 %s1643_s22, 5 }
  0x38   : > { %v333_v2 = vld [vmem:[#allocation5 + $0x1f8] sm:$0xff]  ;;  %374 = vmatpush.msra.mxu2 %v317_v0  ;;  %v315_v5 = vld [vmem:[#allocation5 + $0x168] sm:$0xff]  ;;  %v332_v6 = vld [vmem:[#allocation5 + $0x1f0] sm:$0xff]  ;;  %s1176_s12 = scalar_lea.hbm %s1844_s4, %s1301_s26  ;;  %s1178_s13 = sshll.u32 %s1800_s23, 4  ;;  %s1179_s13 = int_to_ptr.vmem [resolvable:$true] %s1178_s13 }
  0x39   : > { %394 = vmatpush.msra.mxu3 %v333_v2  ;;  %v285_v3 = vld [vmem:[#allocation5 + $0x78] sm:$0xff]  ;;  %v284_v7 = vld [vmem:[#allocation5 + $0x70] sm:$0xff]  ;;  %v331_v9 = vld [vmem:[#allocation5 + $0x1e8] sm:$0xff]  ;;  %s1180_s14 = sshll.u32 %s1176_s12, 4  ;;  %s1165_s19 = scalar_lea.sflag [#allocation4], %s1726_s28  ;;  %s1181_s14 = int_to_ptr.hbm [resolvable:$true] %s1180_s14 }
  0x3a   : > { %v301_v4 = vld [vmem:[#allocation5 + $0xf8] sm:$0xff]  ;;  %334 = vmatpush.msra.mxu0 %v285_v3  ;;  %v300_v8 = vld [vmem:[#allocation5 + $0xf0] sm:$0xff]  ;;  %375 = vmatpush.msra.mxu2 %v316_v1  ;;  %v283_v10 = vld [vmem:[#allocation5 + $0x68] sm:$0xff]  ;;  %s1525_s21 = sshra.s32 %s1181_s14, 4  ;;  %s1531_s5 = scalar_lea.hbm %s1844_s4, 64  ;;  %s1526_s21 = int_to_ptr.hbm [resolvable:$true] %s1525_s21 }
  0x3b   : > { %354 = vmatpush.msra.mxu1 %v301_v4  ;;  %395 = vmatpush.msra.mxu3 %v332_v6  ;;  %v314_v11 = vld [vmem:[#allocation5 + $0x160] sm:$0xff]  ;;  %v299_v12 = vld [vmem:[#allocation5 + $0xe8] sm:$0xff]  ;;  %v313_v16 = vld [vmem:[#allocation5 + $0x158] sm:$0xff]  ;;  %v414_v4 = vlaneseq  ;;  %s1527_s22 = scalar_lea.hbm %s1526_s21, 32  ;;  %p1532_p12 = scmp.lt.s32.totalorder %s1526_s21, %s1844_s4 }
  0x3c   : > { %335 = vmatpush.msra.mxu0 %v284_v7  ;;  %v330_v13 = vld [vmem:[#allocation5 + $0x1e0] sm:$0xff]  ;;  %376 = vmatpush.msra.mxu2 %v315_v5  ;;  %v329_v17 = vld [vmem:[#allocation5 + $0x1d8] sm:$0xff]  ;;  %v312_v20 = vld [vmem:[#allocation5 + $0x150] sm:$0xff]  ;;  %p1528_p1 = scmp.ne.s32.totalorder %s1526_s21, %s1527_s22  ;;  %p1533_p8 = scmp.lt.s32.totalorder %s1531_s5, %s1527_s22 }
  0x3d   : > { %355 = vmatpush.msra.mxu1 %v300_v8  ;;  %396 = vmatpush.msra.mxu3 %v331_v9  ;;  %v282_v14 = vld [vmem:[#allocation5 + $0x60] sm:$0xff]  ;;  %v281_v18 = vld [vmem:[#allocation5 + $0x58] sm:$0xff]  ;;  %v328_v21 = vld [vmem:[#allocation5 + $0x1d0] sm:$0xff]  ;;  %v415_v8 = vand.u32 127, %v414_v4 }
  0x3e   : > { %v298_v15 = vld [vmem:[#allocation5 + $0xe0] sm:$0xff]  ;;  %336 = vmatpush.msra.mxu0 %v283_v10  ;;  %377 = vmatpush.msra.mxu2 %v314_v11  ;;  %v297_v19 = vld [vmem:[#allocation5 + $0xd8] sm:$0xff]  ;;  %v280_v22 = vld [vmem:[#allocation5 + $0x50] sm:$0xff]  ;;  %p1529_p3 = pnand %p1528_p1, %p1695_p13  ;;  %p1534_p7 = por %p1533_p8, %p1532_p12 }
  0x3f   : > { %356 = vmatpush.msra.mxu1 %v299_v12  ;;  %397 = vmatpush.msra.mxu3 %v330_v13  ;;  %v296_v23 = vld [vmem:[#allocation5 + $0xd0] sm:$0xff]  ;;  %v311_v24 = vld [vmem:[#allocation5 + $0x148] sm:$0xff]  ;;  %v310_v28 = vld [vmem:[#allocation5 + $0x140] sm:$0xff]  ;;  %vm416_vm0 = vcmp.lt.s32.totalorder %v415_v8, 25 }
  0x40   : > { %337 = vmatpush.msra.mxu0 %v282_v14  ;;  %378 = vmatpush.msra.mxu2 %v313_v16  ;;  %v327_v25 = vld [vmem:[#allocation5 + $0x1c8] sm:$0xff]  ;;  %v326_v29 = vld [vmem:[#allocation5 + $0x1c0] sm:$0xff]  ;;  %v309_v32 = vld [vmem:[#allocation5 + $0x138] sm:$0xff]  ;;  %p1530_p5 = pneg %p1529_p3 }
  0x41   : > { %357 = vmatpush.msra.mxu1 %v298_v15  ;;  %398 = vmatpush.msra.mxu3 %v329_v17  ;;  %v279_v26 = vld [vmem:[#allocation5 + $0x48] sm:$0xff]  ;;  %v278_v30 = vld [vmem:[#allocation5 + $0x40] sm:$0xff]  ;;  %v325_v33 = vld [vmem:[#allocation5 + $0x1b8] sm:$0xff] }
  0x42   : > { %338 = vmatpush.msra.mxu0 %v281_v18  ;;  %379 = vmatpush.msra.mxu2 %v312_v20  ;;  %v295_v27 = vld [vmem:[#allocation5 + $0xc8] sm:$0xff]  ;;  %v294_v31 = vld [vmem:[#allocation5 + $0xc0] sm:$0xff]  ;;  %v277_v34 = vld [vmem:[#allocation5 + $0x38] sm:$0xff]  ;;  %p1535_p9 = pnand %p1534_p7, %p1530_p5 }
  0x43   : > { %358 = vmatpush.msra.mxu1 %v297_v19  ;;  %399 = vmatpush.msra.mxu3 %v328_v21  ;;  %v293_v35 = vld [vmem:[#allocation5 + $0xb8] sm:$0xff]  ;;  %v308_v36 = vld [vmem:[#allocation5 + $0x130] sm:$0xff]  ;;  %v307_v40 = vld [vmem:[#allocation5 + $0x128] sm:$0xff] }
  0x44   : > { %339 = vmatpush.msra.mxu0 %v280_v22  ;;  %380 = vmatpush.msra.mxu2 %v311_v24  ;;  %v324_v37 = vld [vmem:[#allocation5 + $0x1b0] sm:$0xff]  ;;  %v323_v41 = vld [vmem:[#allocation5 + $0x1a8] sm:$0xff]  ;;  %v306_v44 = vld [vmem:[#allocation5 + $0x120] sm:$0xff] }
  0x45   : > { %359 = vmatpush.msra.mxu1 %v296_v23  ;;  %400 = vmatpush.msra.mxu3 %v327_v25  ;;  %v276_v38 = vld [vmem:[#allocation5 + $0x30] sm:$0xff]  ;;  %v275_v42 = vld [vmem:[#allocation5 + $0x28] sm:$0xff]  ;;  %v322_v45 = vld [vmem:[#allocation5 + $0x1a0] sm:$0xff] }
  0x46   : > { %340 = vmatpush.msra.mxu0 %v279_v26  ;;  %381 = vmatpush.msra.mxu2 %v310_v28  ;;  %v292_v39 = vld [vmem:[#allocation5 + $0xb0] sm:$0xff]  ;;  %v291_v43 = vld [vmem:[#allocation5 + $0xa8] sm:$0xff]  ;;  %v274_v46 = vld [vmem:[#allocation5 + $0x20] sm:$0xff] }
  0x47   : > { %360 = vmatpush.msra.mxu1 %v295_v27  ;;  %401 = vmatpush.msra.mxu3 %v326_v29  ;;  %v290_v47 = vld [vmem:[#allocation5 + $0xa0] sm:$0xff]  ;;  %v305_v48 = vld [vmem:[#allocation5 + $0x118] sm:$0xff]  ;;  %v304_v52 = vld [vmem:[#allocation5 + $0x110] sm:$0xff] }
  0x48   : > { %341 = vmatpush.msra.mxu0 %v278_v30  ;;  %382 = vmatpush.msra.mxu2 %v309_v32  ;;  %v321_v49 = vld [vmem:[#allocation5 + $0x198] sm:$0xff]  ;;  %v320_v53 = vld [vmem:[#allocation5 + $0x190] sm:$0xff]  ;;  %v303_v56 = vld [vmem:[#allocation5 + $0x108] sm:$0xff] }
  0x49   : > { %361 = vmatpush.msra.mxu1 %v294_v31  ;;  %402 = vmatpush.msra.mxu3 %v325_v33  ;;  %v273_v50 = vld [vmem:[#allocation5 + $0x18] sm:$0xff]  ;;  %v272_v54 = vld [vmem:[#allocation5 + $0x10] sm:$0xff]  ;;  %v319_v57 = vld [vmem:[#allocation5 + $0x188] sm:$0xff] }
  0x4a   : > { %342 = vmatpush.msra.mxu0 %v277_v34  ;;  %383 = vmatpush.msra.mxu2 %v308_v36  ;;  %v289_v51 = vld [vmem:[#allocation5 + $0x98] sm:$0xff]  ;;  %v288_v55 = vld [vmem:[#allocation5 + $0x90] sm:$0xff]  ;;  %v271_v58 = vld [vmem:[#allocation5 + $0x8] sm:$0xff] }
  0x4b   : > { %362 = vmatpush.msra.mxu1 %v293_v35  ;;  %403 = vmatpush.msra.mxu3 %v324_v37  ;;  %v287_v59 = vld [vmem:[#allocation5 + $0x88] sm:$0xff]  ;;  %v302_v60 = vld [vmem:[#allocation5 + $0x100] sm:$0xff]  ;;  %v1747_v62 = vld [vmem:[%s1732_s10 + $0x10] sm:$0xff] }
  0x4c   : > { %343 = vmatpush.msra.mxu0 %v276_v38  ;;  %384 = vmatpush.msra.mxu2 %v307_v40  ;;  %v318_v61 = vld [vmem:[#allocation5 + $0x180] sm:$0xff]  ;;  %v1750_v63 = vld [vmem:[%s1732_s10 + $0x18] sm:$0xff]  ;;  %v1756_v3 = vld [vmem:[%s1732_s10 + $0x8] sm:$0xff] }
  0x4d   : > { %363 = vmatpush.msra.mxu1 %v292_v39  ;;  %404 = vmatpush.msra.mxu3 %v323_v41  ;;  %v270_v0 = vld [vmem:[#allocation5] sm:$0xff]  ;;  %v758_v15 = vld [vmem:[#allocation8 + $0x1f0] sm:$0xff]  ;;  %v757_v17 = vld [vmem:[#allocation8 + $0x1e8] sm:$0xff] }
  0x4e   : > { %344 = vmatpush.msra.mxu0 %v275_v42  ;;  %385 = vmatpush.msra.mxu2 %v306_v44  ;;  %v286_v1 = vld [vmem:[#allocation5 + $0x80] sm:$0xff]  ;;  %v754_v18 = vld [vmem:[#allocation8 + $0x1d0] sm:$0xff]  ;;  %v759_v19 = vld [vmem:[#allocation8 + $0x1f8] sm:$0xff] }
  0x4f   : > { %364 = vmatpush.msra.mxu1 %v291_v43  ;;  %405 = vmatpush.msra.mxu3 %v322_v45  ;;  %v1753_v2 = vld [vmem:[%s1732_s10] sm:$0xff]  ;;  %v753_v21 = vld [vmem:[#allocation8 + $0x1c8] sm:$0xff]  ;;  %v750_v22 = vld [vmem:[#allocation8 + $0x1b0] sm:$0xff] }
  0x50   : > { %345 = vmatpush.msra.mxu0 %v274_v46  ;;  %386 = vmatpush.msra.mxu2 %v305_v48  ;;  %v756_v14 = vld [vmem:[#allocation8 + $0x1e0] sm:$0xff]  ;;  %v755_v23 = vld [vmem:[#allocation8 + $0x1d8] sm:$0xff]  ;;  %v749_v24 = vld [vmem:[#allocation8 + $0x1a8] sm:$0xff] }
  0x51   : > { %365 = vmatpush.msra.mxu1 %v290_v47  ;;  %406 = vmatpush.msra.mxu3 %v321_v49  ;;  %v752_v16 = vld [vmem:[#allocation8 + $0x1c0] sm:$0xff]  ;;  %v746_v26 = vld [vmem:[#allocation8 + $0x190] sm:$0xff]  ;;  %v751_v27 = vld [vmem:[#allocation8 + $0x1b8] sm:$0xff] }
  0x52   : > { %346 = vmatpush.msra.mxu0 %v273_v50  ;;  %387 = vmatpush.msra.mxu2 %v304_v52  ;;  %v748_v20 = vld [vmem:[#allocation8 + $0x1a0] sm:$0xff]  ;;  %v745_v28 = vld [vmem:[#allocation8 + $0x188] sm:$0xff]  ;;  %v747_v29 = vld [vmem:[#allocation8 + $0x198] sm:$0xff] }
  0x53   : > { %366 = vmatpush.msra.mxu1 %v289_v51  ;;  %407 = vmatpush.msra.mxu3 %v320_v53  ;;  %v744_v25 = vld [vmem:[#allocation8 + $0x180] sm:$0xff]  ;;  %v742_v31 = vld [vmem:[#allocation8 + $0x170] sm:$0xff]  ;;  %v741_v32 = vld [vmem:[#allocation8 + $0x168] sm:$0xff] }
  0x54   : > { %347 = vmatpush.msra.mxu0 %v272_v54  ;;  %388 = vmatpush.msra.mxu2 %v303_v56  ;;  %v740_v30 = vld [vmem:[#allocation8 + $0x160] sm:$0xff]  ;;  %v743_v33 = vld [vmem:[#allocation8 + $0x178] sm:$0xff]  ;;  %v738_v35 = vld [vmem:[#allocation8 + $0x150] sm:$0xff] }
  0x55   : > { %367 = vmatpush.msra.mxu1 %v288_v55  ;;  %408 = vmatpush.msra.mxu3 %v319_v57  ;;  %v736_v34 = vld [vmem:[#allocation8 + $0x140] sm:$0xff]  ;;  %v737_v36 = vld [vmem:[#allocation8 + $0x148] sm:$0xff]  ;;  %v739_v37 = vld [vmem:[#allocation8 + $0x158] sm:$0xff] }
  0x56   : > { %348 = vmatpush.msra.mxu0 %v271_v58  ;;  %389 = vmatpush.msra.mxu2 %v302_v60  ;;  %v732_v38 = vld [vmem:[#allocation8 + $0x120] sm:$0xff]  ;;  %v734_v39 = vld [vmem:[#allocation8 + $0x130] sm:$0xff]  ;;  %v733_v40 = vld [vmem:[#allocation8 + $0x128] sm:$0xff] }
  0x57   : > { %368 = vmatpush.msra.mxu1 %v287_v59  ;;  %409 = vmatpush.msra.mxu3 %v318_v61  ;;  %v735_v41 = vld [vmem:[#allocation8 + $0x138] sm:$0xff]  ;;  %v728_v42 = vld [vmem:[#allocation8 + $0x100] sm:$0xff]  ;;  %v730_v43 = vld [vmem:[#allocation8 + $0x110] sm:$0xff] }
  0x58   : > { %390 = vmatmul.f32.vlgmr.msra.gmra.mxu2 %v1747_v62  ;;  %410 = vmatmul.f32.vlgmr.msra.gmra.mxu3 %v1750_v63  ;;  %v729_v44 = vld [vmem:[#allocation8 + $0x108] sm:$0xff]  ;;  %v731_v45 = vld [vmem:[#allocation8 + $0x118] sm:$0xff]  ;;  %v724_v46 = vld [vmem:[#allocation8 + $0xe0] sm:$0xff] }
  0x59   : > { %349 = vmatpush.msra.mxu0 %v270_v0  ;;  %369 = vmatpush.msra.mxu1 %v286_v1  ;;  %v726_v47 = vld [vmem:[#allocation8 + $0xf0] sm:$0xff]  ;;  %v725_v48 = vld [vmem:[#allocation8 + $0xe8] sm:$0xff]  ;;  %v727_v49 = vld [vmem:[#allocation8 + $0xf8] sm:$0xff] }
  0x5a   : > { %350 = vmatmul.f32.vlgmr.msra.gmra.mxu0 %v1753_v2  ;;  %370 = vmatmul.f32.vlgmr.msra.gmra.mxu1 %v1756_v3  ;;  %v720_v50 = vld [vmem:[#allocation8 + $0xc0] sm:$0xff]  ;;  %v722_v51 = vld [vmem:[#allocation8 + $0xd0] sm:$0xff]  ;;  %v721_v52 = vld [vmem:[#allocation8 + $0xc8] sm:$0xff] }
  0x5b   : > { %760 = vmatpush.msrb.mxu0 %v756_v14  ;;  %800 = vmatpush.msrb.mxu2 %v758_v15  ;;  %v723_v53 = vld [vmem:[#allocation8 + $0xd8] sm:$0xff]  ;;  %v716_v54 = vld [vmem:[#allocation8 + $0xa0] sm:$0xff]  ;;  %v718_v55 = vld [vmem:[#allocation8 + $0xb0] sm:$0xff] }
  0x5c   : > { %780 = vmatpush.msrb.mxu1 %v757_v17  ;;  %820 = vmatpush.msrb.mxu3 %v759_v19  ;;  %v717_v56 = vld [vmem:[#allocation8 + $0xa8] sm:$0xff]  ;;  %v719_v57 = vld [vmem:[#allocation8 + $0xb8] sm:$0xff]  ;;  %v712_v59 = vld [vmem:[#allocation8 + $0x80] sm:$0xff] }
  0x5d   : > { %761 = vmatpush.msrb.mxu0 %v752_v16  ;;  %801 = vmatpush.msrb.mxu2 %v754_v18  ;;  %v714_v60 = vld [vmem:[#allocation8 + $0x90] sm:$0xff]  ;;  %v713_v0 = vld [vmem:[#allocation8 + $0x88] sm:$0xff]  ;;  %v715_v1 = vld [vmem:[#allocation8 + $0x98] sm:$0xff] }
  0x5e   : > { %781 = vmatpush.msrb.mxu1 %v753_v21  ;;  %821 = vmatpush.msrb.mxu3 %v755_v23  ;;  %v708_v4 = vld [vmem:[#allocation8 + $0x60] sm:$0xff]  ;;  %v711_v8 = vld [vmem:[#allocation8 + $0x78] sm:$0xff]  ;;  %v702_v14 = vld [vmem:[#allocation8 + $0x30] sm:$0xff] }
  0x5f   : > { %762 = vmatpush.msrb.mxu0 %v748_v20  ;;  %802 = vmatpush.msrb.mxu2 %v750_v22  ;;  %v701_v15 = vld [vmem:[#allocation8 + $0x28] sm:$0xff]  ;;  %v703_v16 = vld [vmem:[#allocation8 + $0x38] sm:$0xff]  ;;  %v696_v17 = vld [vmem:[#allocation8] sm:$0xff] }
  0x60   : > { %782 = vmatpush.msrb.mxu1 %v749_v24  ;;  %822 = vmatpush.msrb.mxu3 %v751_v27  ;;  %v698_v18 = vld [vmem:[#allocation8 + $0x10] sm:$0xff]  ;;  %v500_v19 = vld [vmem:[#allocation7 + $0x1e0] sm:$0xff]  ;;  %v697_v21 = vld [vmem:[#allocation8 + $0x8] sm:$0xff] }
  0x61   : > { %763 = vmatpush.msrb.mxu0 %v744_v25  ;;  %803 = vmatpush.msrb.mxu2 %v746_v26  ;;  %v628_v20 = vld [vmem:[#allocation7 + $0x5e0] sm:$0xff]  ;;  %v699_v23 = vld [vmem:[#allocation8 + $0x18] sm:$0xff] }
  0x62   : > { %783 = vmatpush.msrb.mxu1 %v745_v28  ;;  %823 = vmatpush.msrb.mxu3 %v747_v29  ;;  %v496_v24 = vld [vmem:[#allocation7 + $0x1c0] sm:$0xff] }
  0x63   : > { %764 = vmatpush.msrb.mxu0 %v740_v30  ;;  %804 = vmatpush.msrb.mxu2 %v742_v31  ;;  %v564_v25 = vld [vmem:[#allocation7 + $0x3e0] sm:$0xff] }
  0x64   : > { %784 = vmatpush.msrb.mxu1 %v741_v32  ;;  %824 = vmatpush.msrb.mxu3 %v743_v33  ;;  %v624_v26 = vld [vmem:[#allocation7 + $0x5c0] sm:$0xff] }
  0x65   : > { %765 = vmatpush.msrb.mxu0 %v736_v34  ;;  %805 = vmatpush.msrb.mxu2 %v738_v35  ;;  %v692_v27 = vld [vmem:[#allocation7 + $0x7e0] sm:$0xff] }
  0x66   : > { %785 = vmatpush.msrb.mxu1 %v737_v36  ;;  %825 = vmatpush.msrb.mxu3 %v739_v37  ;;  %v492_v28 = vld [vmem:[#allocation7 + $0x1a0] sm:$0xff] }
  0x67   : > { %766 = vmatpush.msrb.mxu0 %v732_v38  ;;  %806 = vmatpush.msrb.mxu2 %v734_v39  ;;  %v560_v29 = vld [vmem:[#allocation7 + $0x3c0] sm:$0xff] }
  0x68   : > { %786 = vmatpush.msrb.mxu1 %v733_v40  ;;  %826 = vmatpush.msrb.mxu3 %v735_v41  ;;  %v620_v30 = vld [vmem:[#allocation7 + $0x5a0] sm:$0xff] }
  0x69   : > { %767 = vmatpush.msrb.mxu0 %v728_v42  ;;  %807 = vmatpush.msrb.mxu2 %v730_v43  ;;  %v688_v31 = vld [vmem:[#allocation7 + $0x7c0] sm:$0xff] }
  0x6a   : > { %787 = vmatpush.msrb.mxu1 %v729_v44  ;;  %827 = vmatpush.msrb.mxu3 %v731_v45  ;;  %v488_v32 = vld [vmem:[#allocation7 + $0x180] sm:$0xff] }
  0x6b   : > { %768 = vmatpush.msrb.mxu0 %v724_v46  ;;  %808 = vmatpush.msrb.mxu2 %v726_v47  ;;  %v556_v33 = vld [vmem:[#allocation7 + $0x3a0] sm:$0xff] }
  0x6c   : > { %788 = vmatpush.msrb.mxu1 %v725_v48  ;;  %828 = vmatpush.msrb.mxu3 %v727_v49  ;;  %v616_v34 = vld [vmem:[#allocation7 + $0x580] sm:$0xff] }
  0x6d   : > { %769 = vmatpush.msrb.mxu0 %v720_v50  ;;  %809 = vmatpush.msrb.mxu2 %v722_v51  ;;  %v684_v35 = vld [vmem:[#allocation7 + $0x7a0] sm:$0xff] }
  0x6e   : > { %789 = vmatpush.msrb.mxu1 %v721_v52  ;;  %829 = vmatpush.msrb.mxu3 %v723_v53  ;;  %v484_v36 = vld [vmem:[#allocation7 + $0x160] sm:$0xff] }
  0x6f   : > { %770 = vmatpush.msrb.mxu0 %v716_v54  ;;  %810 = vmatpush.msrb.mxu2 %v718_v55  ;;  %v552_v37 = vld [vmem:[#allocation7 + $0x380] sm:$0xff] }
  0x70   : > { %790 = vmatpush.msrb.mxu1 %v717_v56  ;;  %830 = vmatpush.msrb.mxu3 %v719_v57  ;;  %v612_v38 = vld [vmem:[#allocation7 + $0x560] sm:$0xff] }
  0x71   : > { %771 = vmatpush.msrb.mxu0 %v712_v59  ;;  %811 = vmatpush.msrb.mxu2 %v714_v60  ;;  %v680_v39 = vld [vmem:[#allocation7 + $0x780] sm:$0xff] }
  0x72   : > { %791 = vmatpush.msrb.mxu1 %v713_v0  ;;  %831 = vmatpush.msrb.mxu3 %v715_v1  ;;  %v480_v40 = vld [vmem:[#allocation7 + $0x140] sm:$0xff] }
  0x73   : > { %772 = vmatpush.msrb.mxu0 %v708_v4  ;;  %v548_v41 = vld [vmem:[#allocation7 + $0x360] sm:$0xff] }
  0x74   : > { %832 = vmatpush.msrb.mxu3 %v711_v8  ;;  %v608_v42 = vld [vmem:[#allocation7 + $0x540] sm:$0xff] }
  0x75   : > { %v676_v43 = vld [vmem:[#allocation7 + $0x760] sm:$0xff] }
  0x76   : > { %v476_v44 = vld [vmem:[#allocation7 + $0x120] sm:$0xff] }
  0x77   : > { %v544_v45 = vld [vmem:[#allocation7 + $0x340] sm:$0xff] }
  0x78   : > { %v604_v46 = vld [vmem:[#allocation7 + $0x520] sm:$0xff] }
  0x79   : > { %v672_v47 = vld [vmem:[#allocation7 + $0x740] sm:$0xff] }
  0x7a   : > { %v472_v48 = vld [vmem:[#allocation7 + $0x100] sm:$0xff] }
  0x7b   : > { %v540_v49 = vld [vmem:[#allocation7 + $0x320] sm:$0xff] }
  0x7c   : > { %v600_v50 = vld [vmem:[#allocation7 + $0x500] sm:$0xff] }
  0x7d   : > { %v668_v51 = vld [vmem:[#allocation7 + $0x720] sm:$0xff] }
  0x7e   : > { %v468_v52 = vld [vmem:[#allocation7 + $0xe0] sm:$0xff] }
  0x7f   : > { %v536_v53 = vld [vmem:[#allocation7 + $0x300] sm:$0xff] }
  0x80   : > { %v596_v54 = vld [vmem:[#allocation7 + $0x4e0] sm:$0xff] }
  0x81   : > { %v664_v55 = vld [vmem:[#allocation7 + $0x700] sm:$0xff] }
  0x82   : > { %v464_v56 = vld [vmem:[#allocation7 + $0xc0] sm:$0xff] }
  0x83   : > { %v532_v57 = vld [vmem:[#allocation7 + $0x2e0] sm:$0xff] }
  0x84   : > { %v660_v59 = vld [vmem:[#allocation7 + $0x6e0] sm:$0xff] }
  0x85   : > { %v460_v60 = vld [vmem:[#allocation7 + $0xa0] sm:$0xff] }
  0x86   : > { %v588_v0 = vld [vmem:[#allocation7 + $0x4a0] sm:$0xff] }
  0x87   : > { %v656_v1 = vld [vmem:[#allocation7 + $0x6c0] sm:$0xff] }
  0x88   : > { %v456_v4 = vld [vmem:[#allocation7 + $0x80] sm:$0xff] }
  0x89   : > { %v452_v8 = vld [vmem:[#allocation7 + $0x60] sm:$0xff] }
  0xd7   : > { %v351_v5 = vpop.f32.mrf.mxu0  ;;  %v371_v6 = vpop.f32.mrf.mxu1 }
  0xd8   : > { %v372_v7 = vadd.f32 %v371_v6, %v351_v5  ;;  %v710_v5 = vld [vmem:[#allocation8 + $0x70] sm:$0xff] }
  0xd9   : > { %812 = vmatpush.msrb.mxu2 %v710_v5  ;;  %v524_v5 = vld [vmem:[#allocation7 + $0x2a0] sm:$0xff] }
  0xdb   : > { %v391_v9 = vpop.f32.mrf.mxu2  ;;  %v411_v10 = vpop.f32.mrf.mxu3 }
  0xdc   : > { %v392_v11 = vadd.f32 %v391_v9, %v372_v7  ;;  %v709_v7 = vld [vmem:[#allocation8 + $0x68] sm:$0xff]  ;;  %v704_v9 = vld [vmem:[#allocation8 + $0x40] sm:$0xff] }
  0xdd   : > { %792 = vmatpush.msrb.mxu1 %v709_v7  ;;  %773 = vmatpush.msrb.mxu0 %v704_v9  ;;  %v652_v7 = vld [vmem:[#allocation7 + $0x6a0] sm:$0xff] }
  0xde   : > { %v412_v12 = vadd.f32 %v411_v10, %v392_v11  ;;  %v706_v10 = vld [vmem:[#allocation8 + $0x50] sm:$0xff]  ;;  %v705_v11 = vld [vmem:[#allocation8 + $0x48] sm:$0xff]  ;;  %v520_v9 = vld [vmem:[#allocation7 + $0x280] sm:$0xff] }
  0xdf   : > { %813 = vmatpush.msrb.mxu2 %v706_v10  ;;  %793 = vmatpush.msrb.mxu1 %v705_v11  ;;  %v580_v10 = vld [vmem:[#allocation7 + $0x460] sm:$0xff] }
  0xe0   : > { %v1762_v13 = vsel %vm416_vm0, %v412_v12, -inf  ;;  %v707_v12 = vld [vmem:[#allocation8 + $0x58] sm:$0xff]  ;;  %v648_v11 = vld [vmem:[#allocation7 + $0x680] sm:$0xff] }
  0xe1   : > { %418 = vmax.xlane.f32.xlu0 %v1762_v13  ;;  %833 = vmatpush.msrb.mxu3 %v707_v12  ;;  %v448_v12 = vld [vmem:[#allocation7 + $0x40] sm:$0xff] }
  0xe2   : > { %814 = vmatpush.msrb.mxu2 %v702_v14  ;;  %794 = vmatpush.msrb.mxu1 %v701_v15  ;;  %v576_v14 = vld [vmem:[#allocation7 + $0x440] sm:$0xff] }
  0xe3   : > { %834 = vmatpush.msrb.mxu3 %v703_v16  ;;  %v644_v15 = vld [vmem:[#allocation7 + $0x660] sm:$0xff] }
  0xe4   : > { %815 = vmatpush.msrb.mxu2 %v698_v18  ;;  %795 = vmatpush.msrb.mxu1 %v697_v21  ;;  %v444_v16 = vld [vmem:[#allocation7 + $0x20] sm:$0xff] }
  0xe5   : > { %835 = vmatpush.msrb.mxu3 %v699_v23  ;;  %v572_v18 = vld [vmem:[#allocation7 + $0x420] sm:$0xff] }
  0xe6   : > { %880 = vmatpush.msra.mxu2 %v628_v20  ;;  %860 = vmatpush.msra.mxu1 %v564_v25  ;;  %v440_v20 = vld [vmem:[#allocation7] sm:$0xff] }
  0xe7   : > { %900 = vmatpush.msra.mxu3 %v692_v27  ;;  %v508_v21 = vld [vmem:[#allocation7 + $0x220] sm:$0xff] }
  0xe8   : > { %881 = vmatpush.msra.mxu2 %v624_v26  ;;  %861 = vmatpush.msra.mxu1 %v560_v29  ;;  %v568_v23 = vld [vmem:[#allocation7 + $0x400] sm:$0xff] }
  0xe9   : > { %901 = vmatpush.msra.mxu3 %v688_v31  ;;  %v504_v25 = vld [vmem:[#allocation7 + $0x200] sm:$0xff] }
  0xea   : > { %882 = vmatpush.msra.mxu2 %v620_v30  ;;  %862 = vmatpush.msra.mxu1 %v556_v33  ;;  %v632_v26 = vld [vmem:[#allocation7 + $0x600] sm:$0xff] }
  0xeb   : > { %902 = vmatpush.msra.mxu3 %v684_v35 }
  0xec   : > { %883 = vmatpush.msra.mxu2 %v616_v34  ;;  %863 = vmatpush.msra.mxu1 %v552_v37 }
  0xed   : > { %903 = vmatpush.msra.mxu3 %v680_v39  ;;  %v501_v39 = vld [vmem:[#allocation7 + $0x1e8] sm:$0xff] }
  0xee   : > { %884 = vmatpush.msra.mxu2 %v612_v38  ;;  %864 = vmatpush.msra.mxu1 %v548_v41  ;;  %v565_v41 = vld [vmem:[#allocation7 + $0x3e8] sm:$0xff] }
  0xef   : > { %904 = vmatpush.msra.mxu3 %v676_v43  ;;  %v497_v43 = vld [vmem:[#allocation7 + $0x1c8] sm:$0xff] }
  0xf0   : > { %885 = vmatpush.msra.mxu2 %v608_v42  ;;  %865 = vmatpush.msra.mxu1 %v544_v45  ;;  %v693_v42 = vld [vmem:[#allocation7 + $0x7e8] sm:$0xff] }
  0xf1   : > { %905 = vmatpush.msra.mxu3 %v672_v47  ;;  %v561_v45 = vld [vmem:[#allocation7 + $0x3c8] sm:$0xff] }
  0xf2   : > { %886 = vmatpush.msra.mxu2 %v604_v46  ;;  %866 = vmatpush.msra.mxu1 %v540_v49  ;;  %v689_v46 = vld [vmem:[#allocation7 + $0x7c8] sm:$0xff] }
  0xf3   : > { %906 = vmatpush.msra.mxu3 %v668_v51  ;;  %v493_v47 = vld [vmem:[#allocation7 + $0x1a8] sm:$0xff] }
  0xf4   : > { %887 = vmatpush.msra.mxu2 %v600_v50  ;;  %867 = vmatpush.msra.mxu1 %v536_v53  ;;  %v685_v49 = vld [vmem:[#allocation7 + $0x7a8] sm:$0xff] }
  0xf5   : > { %907 = vmatpush.msra.mxu3 %v664_v55  ;;  %v489_v50 = vld [vmem:[#allocation7 + $0x188] sm:$0xff] }
  0xf6   : > { %888 = vmatpush.msra.mxu2 %v596_v54  ;;  %868 = vmatpush.msra.mxu1 %v532_v57  ;;  %v617_v51 = vld [vmem:[#allocation7 + $0x588] sm:$0xff] }
  0xf7   : > { %908 = vmatpush.msra.mxu3 %v660_v59  ;;  %v553_v53 = vld [vmem:[#allocation7 + $0x388] sm:$0xff] }
  0xf8   : > { %v613_v54 = vld [vmem:[#allocation7 + $0x568] sm:$0xff] }
  0xf9   : > { %909 = vmatpush.msra.mxu3 %v656_v1  ;;  %v681_v55 = vld [vmem:[#allocation7 + $0x788] sm:$0xff] }
  0xfa   : > { %v549_v57 = vld [vmem:[#allocation7 + $0x368] sm:$0xff] }
  0xfb   : > { %910 = vmatpush.msra.mxu3 %v652_v7  ;;  %v677_v59 = vld [vmem:[#allocation7 + $0x768] sm:$0xff] }
  0xfc   : > { %v673_v1 = vld [vmem:[#allocation7 + $0x748] sm:$0xff] }
  0xfd   : > { %911 = vmatpush.msra.mxu3 %v648_v11  ;;  %v669_v7 = vld [vmem:[#allocation7 + $0x728] sm:$0xff] }
  0xfe   : > { %v665_v11 = vld [vmem:[#allocation7 + $0x708] sm:$0xff] }
  0xff   : > { %912 = vmatpush.msra.mxu3 %v644_v15  ;;  %v661_v15 = vld [vmem:[#allocation7 + $0x6e8] sm:$0xff] }
 0x154   : > { %v419_v58 = vpop.xlane.xlu0 %418 }
 0x155   : > { %v420_v61 = vsub.f32 %v1762_v13, %v419_v58  ;;  %v700_v13 = vld [vmem:[#allocation8 + $0x20] sm:$0xff] }
 0x156   : > { %774 = vmatpush.msrb.mxu0 %v700_v13  ;;  %v592_v58 = vld [vmem:[#allocation7 + $0x4c0] sm:$0xff] }
 0x157   : > { %v421_v6 = vmul.f32 1.442695, %v420_v61  ;;  %889 = vmatpush.msra.mxu2 %v592_v58  ;;  %v528_v61 = vld [vmem:[#allocation7 + $0x2c0] sm:$0xff]  ;;  %v609_v58 = vld [vmem:[#allocation7 + $0x548] sm:$0xff] }
 0x158   : > { %775 = vmatpush.msrb.mxu0 %v696_v17  ;;  %869 = vmatpush.msra.mxu1 %v528_v61  ;;  %v516_v13 = vld [vmem:[#allocation7 + $0x260] sm:$0xff]  ;;  %v545_v61 = vld [vmem:[#allocation7 + $0x348] sm:$0xff] }
 0x159   : > { %1383 = vpow2.f32 %v421_v6  ;;  %890 = vmatpush.msra.mxu2 %v588_v0  ;;  %v584_v6 = vld [vmem:[#allocation7 + $0x480] sm:$0xff]  ;;  %v605_v0 = vld [vmem:[#allocation7 + $0x528] sm:$0xff] }
 0x15a   : > { %840 = vmatpush.msra.mxu0 %v500_v19  ;;  %870 = vmatpush.msra.mxu1 %v524_v5  ;;  %v512_v17 = vld [vmem:[#allocation7 + $0x240] sm:$0xff]  ;;  %v541_v5 = vld [vmem:[#allocation7 + $0x328] sm:$0xff] }
 0x15b   : > { %891 = vmatpush.msra.mxu2 %v584_v6  ;;  %v640_v19 = vld [vmem:[#allocation7 + $0x640] sm:$0xff]  ;;  %v601_v6 = vld [vmem:[#allocation7 + $0x508] sm:$0xff] }
 0x15c   : > { %841 = vmatpush.msra.mxu0 %v496_v24  ;;  %871 = vmatpush.msra.mxu1 %v520_v9  ;;  %v636_v24 = vld [vmem:[#allocation7 + $0x620] sm:$0xff]  ;;  %v537_v9 = vld [vmem:[#allocation7 + $0x308] sm:$0xff] }
 0x15d   : > { %892 = vmatpush.msra.mxu2 %v580_v10  ;;  %913 = vmatpush.msra.mxu3 %v640_v19  ;;  %v597_v10 = vld [vmem:[#allocation7 + $0x4e8] sm:$0xff] }
 0x15e   : > { %842 = vmatpush.msra.mxu0 %v492_v28  ;;  %872 = vmatpush.msra.mxu1 %v516_v13  ;;  %v533_v13 = vld [vmem:[#allocation7 + $0x2e8] sm:$0xff] }
 0x15f   : > { %v1766_v22 = vpop.eup %1383  ;;  %893 = vmatpush.msra.mxu2 %v576_v14  ;;  %914 = vmatpush.msra.mxu3 %v636_v24  ;;  %v593_v14 = vld [vmem:[#allocation7 + $0x4c8] sm:$0xff] }
 0x160   : > { %423 = vadd.xlane.f32.xlu0 %v1766_v22  ;;  %843 = vmatpush.msra.mxu0 %v488_v32  ;;  %v657_v19 = vld [vmem:[#allocation7 + $0x6c8] sm:$0xff] }
 0x161   : > { %873 = vmatpush.msra.mxu1 %v512_v17  ;;  %894 = vmatpush.msra.mxu2 %v572_v18  ;;  %v529_v17 = vld [vmem:[#allocation7 + $0x2c8] sm:$0xff] }
 0x162   : > { %844 = vmatpush.msra.mxu0 %v484_v36  ;;  %915 = vmatpush.msra.mxu3 %v632_v26  ;;  %v589_v18 = vld [vmem:[#allocation7 + $0x4a8] sm:$0xff] }
 0x163   : > { %874 = vmatpush.msra.mxu1 %v508_v21  ;;  %895 = vmatpush.msra.mxu2 %v568_v23  ;;  %v525_v21 = vld [vmem:[#allocation7 + $0x2a8] sm:$0xff] }
 0x164   : > { %845 = vmatpush.msra.mxu0 %v480_v40  ;;  %v629_v40 = vld [vmem:[#allocation7 + $0x5e8] sm:$0xff] }
 0x165   : > { %875 = vmatpush.msra.mxu1 %v504_v25  ;;  %v585_v23 = vld [vmem:[#allocation7 + $0x488] sm:$0xff] }
 0x166   : > { %846 = vmatpush.msra.mxu0 %v476_v44  ;;  %v625_v44 = vld [vmem:[#allocation7 + $0x5c8] sm:$0xff] }
 0x167   : > { %v653_v24 = vld [vmem:[#allocation7 + $0x6a8] sm:$0xff] }
 0x168   : > { %847 = vmatpush.msra.mxu0 %v472_v48  ;;  %v621_v48 = vld [vmem:[#allocation7 + $0x5a8] sm:$0xff] }
 0x169   : > { %v453_v25 = vld [vmem:[#allocation7 + $0x68] sm:$0xff] }
 0x16a   : > { %848 = vmatpush.msra.mxu0 %v468_v52  ;;  %v485_v52 = vld [vmem:[#allocation7 + $0x168] sm:$0xff] }
 0x16b   : > { %v521_v26 = vld [vmem:[#allocation7 + $0x288] sm:$0xff] }
 0x16c   : > { %849 = vmatpush.msra.mxu0 %v464_v56  ;;  %v481_v56 = vld [vmem:[#allocation7 + $0x148] sm:$0xff] }
 0x16e   : > { %850 = vmatpush.msra.mxu0 %v460_v60  ;;  %v477_v60 = vld [vmem:[#allocation7 + $0x128] sm:$0xff] }
 0x170   : > { %851 = vmatpush.msra.mxu0 %v456_v4  ;;  %v473_v4 = vld [vmem:[#allocation7 + $0x108] sm:$0xff] }
 0x172   : > { %852 = vmatpush.msra.mxu0 %v452_v8  ;;  %v469_v8 = vld [vmem:[#allocation7 + $0xe8] sm:$0xff] }
 0x174   : > { %853 = vmatpush.msra.mxu0 %v448_v12  ;;  %v465_v12 = vld [vmem:[#allocation7 + $0xc8] sm:$0xff] }
 0x176   : > { %854 = vmatpush.msra.mxu0 %v444_v16  ;;  %v461_v16 = vld [vmem:[#allocation7 + $0xa8] sm:$0xff] }
 0x178   : > { %855 = vmatpush.msra.mxu0 %v440_v20  ;;  %v457_v20 = vld [vmem:[#allocation7 + $0x88] sm:$0xff] }
 0x1d3   : > { %v424_v27 = vpop.xlane.xlu0 %423 }
 0x1d4   : > { %1385 = vrcp.f32 %v424_v27  ;;  %v436_v31 = vand.u32 2147483648, %v424_v27  ;;  %v434_v33 = vand.u32 2147483647, %v424_v27  ;;  %vm430_vm2 = vweird.f32 %v424_v27 }
 0x1d6   : > { %v437_v35 = vor.u32 1.1754944e-38, %v436_v31  ;;  %vm435_vm4 = vcmp.eq.f32.partialorder %v434_v33, 8.507059e+37  ;;  %v577_v31 = vld [vmem:[#allocation7 + $0x448] sm:$0xff] }
 0x1d7   : > { %v445_v33 = vld [vmem:[#allocation7 + $0x28] sm:$0xff] }
 0x1da   : > { %v1386_v28 = vpop.eup %1385 }
 0x1db   : > { %v426_v29 = vmul.f32 %v1386_v28, %v424_v27  ;;  %vm431_vm1 = vweird.f32 %v1386_v28  ;;  %v581_v27 = vld [vmem:[#allocation7 + $0x468] sm:$0xff] }
 0x1dc   : > { %vm432_vm3 = vmor %vm430_vm2, %vm431_vm1 }
 0x1dd   : > { %v427_v30 = vsub.f32 1.0, %v426_v29  ;;  %v449_v29 = vld [vmem:[#allocation7 + $0x48] sm:$0xff] }
 0x1df   : > { %v428_v32 = vmul.f32 %v1386_v28, %v427_v30  ;;  %v517_v30 = vld [vmem:[#allocation7 + $0x268] sm:$0xff] }
 0x1e1   : > { %v429_v34 = vadd.f32 %v1386_v28, %v428_v32  ;;  %v645_v32 = vld [vmem:[#allocation7 + $0x668] sm:$0xff] }
 0x1e3   : > { %v433_v36 = vsel %vm432_vm3, %v1386_v28, %v429_v34  ;;  %v649_v28 = vld [vmem:[#allocation7 + $0x688] sm:$0xff] }
 0x1e4   : > { %v438_v37 = vsel %vm435_vm4, %v437_v35, %v433_v36  ;;  %v513_v34 = vld [vmem:[#allocation7 + $0x248] sm:$0xff] }
 0x1e5   : > { %v439_v38 = vmul.f32 %v1766_v22, %v438_v37  ;;  %v557_v22 = vld [vmem:[#allocation7 + $0x3a8] sm:$0xff] }
 0x1e6   : > { %v573_v35 = vld [vmem:[#allocation7 + $0x428] sm:$0xff] }
 0x1e7   : > { %776 = vmatmul.f32.vlgmr.msrb.gmra.mxu0 %v439_v38  ;;  %796 = vmatmul.f32.vlgmr.msrb.gmra.mxu1 %v439_v38  ;;  %v641_v36 = vld [vmem:[#allocation7 + $0x648] sm:$0xff] }
 0x1e8   : > { %816 = vmatmul.f32.vlgmr.msrb.gmra.mxu2 %v439_v38  ;;  %836 = vmatmul.f32.vlgmr.msrb.gmra.mxu3 %v439_v38  ;;  %v441_v37 = vld [vmem:[#allocation7 + $0x8] sm:$0xff] }
 0x1e9   : > { %920 = vmatpush.msrb.mxu0 %v501_v39  ;;  %960 = vmatpush.msrb.mxu2 %v629_v40  ;;  %v509_v38 = vld [vmem:[#allocation7 + $0x228] sm:$0xff] }
 0x1ea   : > { %940 = vmatpush.msrb.mxu1 %v565_v41  ;;  %980 = vmatpush.msrb.mxu3 %v693_v42  ;;  %v569_v39 = vld [vmem:[#allocation7 + $0x408] sm:$0xff]  ;;  %v502_v41 = vld [vmem:[#allocation7 + $0x1f0] sm:$0xff] }
 0x1eb   : > { %921 = vmatpush.msrb.mxu0 %v497_v43  ;;  %961 = vmatpush.msrb.mxu2 %v625_v44  ;;  %v637_v40 = vld [vmem:[#allocation7 + $0x628] sm:$0xff]  ;;  %v630_v42 = vld [vmem:[#allocation7 + $0x5f0] sm:$0xff] }
 0x1ec   : > { %941 = vmatpush.msrb.mxu1 %v561_v45  ;;  %981 = vmatpush.msrb.mxu3 %v689_v46  ;;  %v505_v43 = vld [vmem:[#allocation7 + $0x208] sm:$0xff]  ;;  %v498_v45 = vld [vmem:[#allocation7 + $0x1d0] sm:$0xff] }
 0x1ed   : > { %922 = vmatpush.msrb.mxu0 %v493_v47  ;;  %962 = vmatpush.msrb.mxu2 %v621_v48  ;;  %v633_v44 = vld [vmem:[#allocation7 + $0x608] sm:$0xff]  ;;  %v566_v46 = vld [vmem:[#allocation7 + $0x3f0] sm:$0xff] }
 0x1ee   : > { %942 = vmatpush.msrb.mxu1 %v557_v22  ;;  %982 = vmatpush.msrb.mxu3 %v685_v49  ;;  %v626_v47 = vld [vmem:[#allocation7 + $0x5d0] sm:$0xff] }
 0x1ef   : > { %923 = vmatpush.msrb.mxu0 %v489_v50  ;;  %963 = vmatpush.msrb.mxu2 %v617_v51  ;;  %v694_v48 = vld [vmem:[#allocation7 + $0x7f0] sm:$0xff] }
 0x1f0   : > { %856 = vmatmul.f32.vlgmr.msra.gmra.mxu0 %v1753_v2  ;;  %896 = vmatmul.f32.vlgmr.msra.gmra.mxu2 %v1747_v62  ;;  %v494_v22 = vld [vmem:[#allocation7 + $0x1b0] sm:$0xff] }
 0x1f1   : > { %924 = vmatpush.msrb.mxu0 %v485_v52  ;;  %943 = vmatpush.msrb.mxu1 %v553_v53  ;;  %v562_v49 = vld [vmem:[#allocation7 + $0x3d0] sm:$0xff] }
 0x1f2   : > { %964 = vmatpush.msrb.mxu2 %v613_v54  ;;  %983 = vmatpush.msrb.mxu3 %v681_v55  ;;  %v622_v50 = vld [vmem:[#allocation7 + $0x5b0] sm:$0xff] }
 0x1f3   : > { %876 = vmatmul.f32.vlgmr.msra.gmra.mxu1 %v1756_v3  ;;  %916 = vmatmul.f32.vlgmr.msra.gmra.mxu3 %v1750_v63  ;;  %v558_v51 = vld [vmem:[#allocation7 + $0x3b0] sm:$0xff] }
 0x1f4   : > { %925 = vmatpush.msrb.mxu0 %v481_v56  ;;  %944 = vmatpush.msrb.mxu1 %v549_v57  ;;  %v618_v52 = vld [vmem:[#allocation7 + $0x590] sm:$0xff] }
 0x1f5   : > { %965 = vmatpush.msrb.mxu2 %v609_v58  ;;  %984 = vmatpush.msrb.mxu3 %v677_v59  ;;  %v686_v53 = vld [vmem:[#allocation7 + $0x7b0] sm:$0xff] }
 0x1f6   : > { %926 = vmatpush.msrb.mxu0 %v477_v60  ;;  %945 = vmatpush.msrb.mxu1 %v545_v61  ;;  %v486_v54 = vld [vmem:[#allocation7 + $0x170] sm:$0xff] }
 0x1f7   : > { %966 = vmatpush.msrb.mxu2 %v605_v0  ;;  %985 = vmatpush.msrb.mxu3 %v673_v1  ;;  %v682_v55 = vld [vmem:[#allocation7 + $0x790] sm:$0xff] }
 0x1f8   : > { %927 = vmatpush.msrb.mxu0 %v473_v4  ;;  %946 = vmatpush.msrb.mxu1 %v541_v5  ;;  %v482_v56 = vld [vmem:[#allocation7 + $0x150] sm:$0xff] }
 0x1f9   : > { %967 = vmatpush.msrb.mxu2 %v601_v6  ;;  %986 = vmatpush.msrb.mxu3 %v669_v7  ;;  %v550_v57 = vld [vmem:[#allocation7 + $0x370] sm:$0xff] }
 0x1fa   : > { %928 = vmatpush.msrb.mxu0 %v469_v8  ;;  %947 = vmatpush.msrb.mxu1 %v537_v9  ;;  %v610_v58 = vld [vmem:[#allocation7 + $0x550] sm:$0xff] }
 0x1fb   : > { %968 = vmatpush.msrb.mxu2 %v597_v10  ;;  %987 = vmatpush.msrb.mxu3 %v665_v11  ;;  %v678_v59 = vld [vmem:[#allocation7 + $0x770] sm:$0xff] }
 0x1fc   : > { %929 = vmatpush.msrb.mxu0 %v465_v12  ;;  %948 = vmatpush.msrb.mxu1 %v533_v13  ;;  %v478_v60 = vld [vmem:[#allocation7 + $0x130] sm:$0xff] }
 0x1fd   : > { %969 = vmatpush.msrb.mxu2 %v593_v14  ;;  %988 = vmatpush.msrb.mxu3 %v661_v15  ;;  %v546_v61 = vld [vmem:[#allocation7 + $0x350] sm:$0xff] }
 0x1fe   : > { %930 = vmatpush.msrb.mxu0 %v461_v16  ;;  %949 = vmatpush.msrb.mxu1 %v529_v17  ;;  %v606_v0 = vld [vmem:[#allocation7 + $0x530] sm:$0xff] }
 0x1ff   : > { %970 = vmatpush.msrb.mxu2 %v589_v18  ;;  %989 = vmatpush.msrb.mxu3 %v657_v19  ;;  %v674_v1 = vld [vmem:[#allocation7 + $0x750] sm:$0xff] }
 0x200   : > { %931 = vmatpush.msrb.mxu0 %v457_v20  ;;  %950 = vmatpush.msrb.mxu1 %v525_v21  ;;  %v474_v4 = vld [vmem:[#allocation7 + $0x110] sm:$0xff] }
 0x201   : > { %971 = vmatpush.msrb.mxu2 %v585_v23  ;;  %990 = vmatpush.msrb.mxu3 %v653_v24  ;;  %v542_v5 = vld [vmem:[#allocation7 + $0x330] sm:$0xff] }
 0x202   : > { %932 = vmatpush.msrb.mxu0 %v453_v25  ;;  %951 = vmatpush.msrb.mxu1 %v521_v26  ;;  %v602_v6 = vld [vmem:[#allocation7 + $0x510] sm:$0xff] }
 0x203   : > { %972 = vmatpush.msrb.mxu2 %v581_v27  ;;  %991 = vmatpush.msrb.mxu3 %v649_v28  ;;  %v670_v7 = vld [vmem:[#allocation7 + $0x730] sm:$0xff] }
 0x204   : > { %933 = vmatpush.msrb.mxu0 %v449_v29  ;;  %952 = vmatpush.msrb.mxu1 %v517_v30  ;;  %v470_v8 = vld [vmem:[#allocation7 + $0xf0] sm:$0xff] }
 0x205   : > { %973 = vmatpush.msrb.mxu2 %v577_v31  ;;  %992 = vmatpush.msrb.mxu3 %v645_v32  ;;  %v538_v9 = vld [vmem:[#allocation7 + $0x310] sm:$0xff] }
 0x206   : > { %934 = vmatpush.msrb.mxu0 %v445_v33  ;;  %953 = vmatpush.msrb.mxu1 %v513_v34  ;;  %v598_v10 = vld [vmem:[#allocation7 + $0x4f0] sm:$0xff] }
 0x207   : > { %974 = vmatpush.msrb.mxu2 %v573_v35  ;;  %993 = vmatpush.msrb.mxu3 %v641_v36  ;;  %v666_v11 = vld [vmem:[#allocation7 + $0x710] sm:$0xff] }
 0x208   : > { %935 = vmatpush.msrb.mxu0 %v441_v37  ;;  %954 = vmatpush.msrb.mxu1 %v509_v38  ;;  %v466_v12 = vld [vmem:[#allocation7 + $0xd0] sm:$0xff] }
 0x209   : > { %975 = vmatpush.msrb.mxu2 %v569_v39  ;;  %994 = vmatpush.msrb.mxu3 %v637_v40  ;;  %v534_v13 = vld [vmem:[#allocation7 + $0x2f0] sm:$0xff] }
 0x20a   : > { %936 = vmatmul.f32.vlgmr.msrb.gmra.mxu0 %v1753_v2  ;;  %976 = vmatmul.f32.vlgmr.msrb.gmra.mxu2 %v1747_v62  ;;  %v690_v2 = vld [vmem:[#allocation7 + $0x7d0] sm:$0xff] }
 0x20b   : > { %1000 = vmatpush.msra.mxu0 %v502_v41  ;;  %1040 = vmatpush.msra.mxu2 %v630_v42  ;;  %v490_v62 = vld [vmem:[#allocation7 + $0x190] sm:$0xff]  ;;  %v503_v41 = vld [vmem:[#allocation7 + $0x1f8] sm:$0xff] }
 0x20c   : > { %955 = vmatpush.msrb.mxu1 %v505_v43  ;;  %995 = vmatpush.msrb.mxu3 %v633_v44  ;;  %v594_v14 = vld [vmem:[#allocation7 + $0x4d0] sm:$0xff]  ;;  %v631_v42 = vld [vmem:[#allocation7 + $0x5f8] sm:$0xff] }
 0x20d   : > { %956 = vmatmul.f32.vlgmr.msrb.gmra.mxu1 %v1756_v3  ;;  %996 = vmatmul.f32.vlgmr.msrb.gmra.mxu3 %v1750_v63  ;;  %v554_v3 = vld [vmem:[#allocation7 + $0x390] sm:$0xff] }
 0x20e   : > { %1001 = vmatpush.msra.mxu0 %v498_v45  ;;  %1020 = vmatpush.msra.mxu1 %v566_v46  ;;  %v614_v63 = vld [vmem:[#allocation7 + $0x570] sm:$0xff]  ;;  %v1779_v45 = vld [vmem:[%s1732_s10] sm:$0xff] }
 0x20f   : > { %1041 = vmatpush.msra.mxu2 %v626_v47  ;;  %1060 = vmatpush.msra.mxu3 %v694_v48  ;;  %v662_v15 = vld [vmem:[#allocation7 + $0x6f0] sm:$0xff]  ;;  %v499_v47 = vld [vmem:[#allocation7 + $0x1d8] sm:$0xff] }
 0x210   : > { %1002 = vmatpush.msra.mxu0 %v494_v22  ;;  %1021 = vmatpush.msra.mxu1 %v562_v49  ;;  %v462_v16 = vld [vmem:[#allocation7 + $0xb0] sm:$0xff]  ;;  %v567_v48 = vld [vmem:[#allocation7 + $0x3f8] sm:$0xff] }
 0x211   : > { %1042 = vmatpush.msra.mxu2 %v622_v50  ;;  %1061 = vmatpush.msra.mxu3 %v690_v2  ;;  %v530_v17 = vld [vmem:[#allocation7 + $0x2d0] sm:$0xff]  ;;  %v627_v22 = vld [vmem:[#allocation7 + $0x5d8] sm:$0xff]  ;;  %v1787_v50 = vld [vmem:[%s1732_s10 + $0x8] sm:$0xff] }
 0x212   : > { %1003 = vmatpush.msra.mxu0 %v490_v62  ;;  %1022 = vmatpush.msra.mxu1 %v558_v51  ;;  %v590_v18 = vld [vmem:[#allocation7 + $0x4b0] sm:$0xff]  ;;  %v695_v49 = vld [vmem:[#allocation7 + $0x7f8] sm:$0xff] }
 0x213   : > { %1043 = vmatpush.msra.mxu2 %v618_v52  ;;  %1062 = vmatpush.msra.mxu3 %v686_v53  ;;  %v658_v19 = vld [vmem:[#allocation7 + $0x6d0] sm:$0xff]  ;;  %v1791_v2 = vld [vmem:[%s1732_s10 + $0x18] sm:$0xff] }
 0x214   : > { %1004 = vmatpush.msra.mxu0 %v486_v54  ;;  %1023 = vmatpush.msra.mxu1 %v554_v3  ;;  %v458_v20 = vld [vmem:[#allocation7 + $0x90] sm:$0xff]  ;;  %v495_v62 = vld [vmem:[#allocation7 + $0x1b8] sm:$0xff] }
 0x215   : > { %1044 = vmatpush.msra.mxu2 %v614_v63  ;;  %1063 = vmatpush.msra.mxu3 %v682_v55  ;;  %v526_v21 = vld [vmem:[#allocation7 + $0x2b0] sm:$0xff]  ;;  %v563_v51 = vld [vmem:[#allocation7 + $0x3d8] sm:$0xff] }
 0x216   : > { %1005 = vmatpush.msra.mxu0 %v482_v56  ;;  %1024 = vmatpush.msra.mxu1 %v550_v57  ;;  %v586_v23 = vld [vmem:[#allocation7 + $0x490] sm:$0xff]  ;;  %v623_v52 = vld [vmem:[#allocation7 + $0x5b8] sm:$0xff] }
 0x217   : > { %1045 = vmatpush.msra.mxu2 %v610_v58  ;;  %1064 = vmatpush.msra.mxu3 %v678_v59  ;;  %v654_v24 = vld [vmem:[#allocation7 + $0x6b0] sm:$0xff]  ;;  %v691_v53 = vld [vmem:[#allocation7 + $0x7d8] sm:$0xff] }
 0x218   : > { %1006 = vmatpush.msra.mxu0 %v478_v60  ;;  %1025 = vmatpush.msra.mxu1 %v546_v61  ;;  %v454_v25 = vld [vmem:[#allocation7 + $0x70] sm:$0xff]  ;;  %v491_v54 = vld [vmem:[#allocation7 + $0x198] sm:$0xff] }
 0x219   : > { %1046 = vmatpush.msra.mxu2 %v606_v0  ;;  %1065 = vmatpush.msra.mxu3 %v674_v1  ;;  %v522_v26 = vld [vmem:[#allocation7 + $0x290] sm:$0xff]  ;;  %v559_v3 = vld [vmem:[#allocation7 + $0x3b8] sm:$0xff] }
 0x21a   : > { %1007 = vmatpush.msra.mxu0 %v474_v4  ;;  %1026 = vmatpush.msra.mxu1 %v542_v5  ;;  %v582_v27 = vld [vmem:[#allocation7 + $0x470] sm:$0xff]  ;;  %v619_v63 = vld [vmem:[#allocation7 + $0x598] sm:$0xff] }
 0x21b   : > { %1047 = vmatpush.msra.mxu2 %v602_v6  ;;  %1066 = vmatpush.msra.mxu3 %v670_v7  ;;  %v650_v28 = vld [vmem:[#allocation7 + $0x690] sm:$0xff]  ;;  %v687_v55 = vld [vmem:[#allocation7 + $0x7b8] sm:$0xff] }
 0x21c   : > { %1008 = vmatpush.msra.mxu0 %v470_v8  ;;  %1027 = vmatpush.msra.mxu1 %v538_v9  ;;  %v450_v29 = vld [vmem:[#allocation7 + $0x50] sm:$0xff]  ;;  %v487_v56 = vld [vmem:[#allocation7 + $0x178] sm:$0xff] }
 0x21d   : > { %1048 = vmatpush.msra.mxu2 %v598_v10  ;;  %1067 = vmatpush.msra.mxu3 %v666_v11  ;;  %v518_v30 = vld [vmem:[#allocation7 + $0x270] sm:$0xff]  ;;  %v555_v57 = vld [vmem:[#allocation7 + $0x398] sm:$0xff] }
 0x21e   : > { %1009 = vmatpush.msra.mxu0 %v466_v12  ;;  %1028 = vmatpush.msra.mxu1 %v534_v13  ;;  %v578_v31 = vld [vmem:[#allocation7 + $0x450] sm:$0xff]  ;;  %v615_v58 = vld [vmem:[#allocation7 + $0x578] sm:$0xff] }
 0x21f   : > { %1049 = vmatpush.msra.mxu2 %v594_v14  ;;  %1068 = vmatpush.msra.mxu3 %v662_v15  ;;  %v646_v32 = vld [vmem:[#allocation7 + $0x670] sm:$0xff]  ;;  %v683_v59 = vld [vmem:[#allocation7 + $0x798] sm:$0xff] }
 0x220   : > { %1010 = vmatpush.msra.mxu0 %v462_v16  ;;  %1029 = vmatpush.msra.mxu1 %v530_v17  ;;  %v446_v33 = vld [vmem:[#allocation7 + $0x30] sm:$0xff]  ;;  %v483_v60 = vld [vmem:[#allocation7 + $0x158] sm:$0xff] }
 0x221   : > { %1050 = vmatpush.msra.mxu2 %v590_v18  ;;  %1069 = vmatpush.msra.mxu3 %v658_v19  ;;  %v514_v34 = vld [vmem:[#allocation7 + $0x250] sm:$0xff]  ;;  %v551_v61 = vld [vmem:[#allocation7 + $0x378] sm:$0xff] }
 0x222   : > { %1011 = vmatpush.msra.mxu0 %v458_v20  ;;  %1030 = vmatpush.msra.mxu1 %v526_v21  ;;  %v574_v35 = vld [vmem:[#allocation7 + $0x430] sm:$0xff]  ;;  %v611_v0 = vld [vmem:[#allocation7 + $0x558] sm:$0xff] }
 0x223   : > { %1051 = vmatpush.msra.mxu2 %v586_v23  ;;  %1070 = vmatpush.msra.mxu3 %v654_v24  ;;  %v642_v36 = vld [vmem:[#allocation7 + $0x650] sm:$0xff]  ;;  %v679_v1 = vld [vmem:[#allocation7 + $0x778] sm:$0xff] }
 0x224   : > { %1012 = vmatpush.msra.mxu0 %v454_v25  ;;  %1031 = vmatpush.msra.mxu1 %v522_v26  ;;  %v442_v37 = vld [vmem:[#allocation7 + $0x10] sm:$0xff]  ;;  %v479_v4 = vld [vmem:[#allocation7 + $0x138] sm:$0xff] }
 0x225   : > { %1052 = vmatpush.msra.mxu2 %v582_v27  ;;  %1071 = vmatpush.msra.mxu3 %v650_v28  ;;  %v510_v38 = vld [vmem:[#allocation7 + $0x230] sm:$0xff]  ;;  %v547_v5 = vld [vmem:[#allocation7 + $0x358] sm:$0xff] }
 0x226   : > { %1013 = vmatpush.msra.mxu0 %v450_v29  ;;  %1032 = vmatpush.msra.mxu1 %v518_v30  ;;  %v570_v39 = vld [vmem:[#allocation7 + $0x410] sm:$0xff]  ;;  %v607_v6 = vld [vmem:[#allocation7 + $0x538] sm:$0xff] }
 0x227   : > { %1053 = vmatpush.msra.mxu2 %v578_v31  ;;  %1072 = vmatpush.msra.mxu3 %v646_v32  ;;  %v638_v40 = vld [vmem:[#allocation7 + $0x630] sm:$0xff]  ;;  %v675_v7 = vld [vmem:[#allocation7 + $0x758] sm:$0xff] }
 0x228   : > { %1014 = vmatpush.msra.mxu0 %v446_v33  ;;  %1033 = vmatpush.msra.mxu1 %v514_v34  ;;  %v506_v43 = vld [vmem:[#allocation7 + $0x210] sm:$0xff]  ;;  %v475_v8 = vld [vmem:[#allocation7 + $0x118] sm:$0xff] }
 0x229   : > { %1054 = vmatpush.msra.mxu2 %v574_v35  ;;  %1073 = vmatpush.msra.mxu3 %v642_v36  ;;  %v634_v44 = vld [vmem:[#allocation7 + $0x610] sm:$0xff]  ;;  %v543_v9 = vld [vmem:[#allocation7 + $0x338] sm:$0xff] }
 0x22a   : > { %1015 = vmatpush.msra.mxu0 %v442_v37  ;;  %1034 = vmatpush.msra.mxu1 %v510_v38  ;;  %v1783_v46 = vld [vmem:[%s1732_s10 + $0x10] sm:$0xff]  ;;  %v603_v10 = vld [vmem:[#allocation7 + $0x518] sm:$0xff] }
 0x22b   : > { %1055 = vmatpush.msra.mxu2 %v570_v39  ;;  %1074 = vmatpush.msra.mxu3 %v638_v40  ;;  %v671_v11 = vld [vmem:[#allocation7 + $0x738] sm:$0xff] }
 0x22c   : > { %1016 = vmatmul.f32.vlgmr.msra.gmra.mxu0 %v1779_v45  ;;  %1056 = vmatmul.f32.vlgmr.msra.gmra.mxu2 %v1783_v46  ;;  %v471_v12 = vld [vmem:[#allocation7 + $0xf8] sm:$0xff] }
 0x22d   : > { %1080 = vmatpush.msrb.mxu0 %v503_v41  ;;  %1120 = vmatpush.msrb.mxu2 %v631_v42  ;;  %v539_v13 = vld [vmem:[#allocation7 + $0x318] sm:$0xff] }
 0x22e   : > { %1035 = vmatpush.msra.mxu1 %v506_v43  ;;  %1075 = vmatpush.msra.mxu3 %v634_v44  ;;  %v599_v14 = vld [vmem:[#allocation7 + $0x4f8] sm:$0xff] }
 0x22f   : > { %1036 = vmatmul.f32.vlgmr.msra.gmra.mxu1 %v1787_v50  ;;  %1076 = vmatmul.f32.vlgmr.msra.gmra.mxu3 %v1791_v2  ;;  %v667_v15 = vld [vmem:[#allocation7 + $0x718] sm:$0xff] }
 0x230   : > { %1081 = vmatpush.msrb.mxu0 %v499_v47  ;;  %1100 = vmatpush.msrb.mxu1 %v567_v48  ;;  %v467_v16 = vld [vmem:[#allocation7 + $0xd8] sm:$0xff] }
 0x231   : > { %1121 = vmatpush.msrb.mxu2 %v627_v22  ;;  %1140 = vmatpush.msrb.mxu3 %v695_v49  ;;  %v535_v17 = vld [vmem:[#allocation7 + $0x2f8] sm:$0xff] }
 0x232   : > { %1082 = vmatpush.msrb.mxu0 %v495_v62  ;;  %1101 = vmatpush.msrb.mxu1 %v563_v51  ;;  %v595_v18 = vld [vmem:[#allocation7 + $0x4d8] sm:$0xff] }
 0x233   : > { %1122 = vmatpush.msrb.mxu2 %v623_v52  ;;  %1141 = vmatpush.msrb.mxu3 %v691_v53  ;;  %v663_v19 = vld [vmem:[#allocation7 + $0x6f8] sm:$0xff] }
 0x234   : > { %1083 = vmatpush.msrb.mxu0 %v491_v54  ;;  %1102 = vmatpush.msrb.mxu1 %v559_v3  ;;  %v463_v20 = vld [vmem:[#allocation7 + $0xb8] sm:$0xff] }
 0x235   : > { %1123 = vmatpush.msrb.mxu2 %v619_v63  ;;  %1142 = vmatpush.msrb.mxu3 %v687_v55  ;;  %v531_v21 = vld [vmem:[#allocation7 + $0x2d8] sm:$0xff] }
 0x236   : > { %1084 = vmatpush.msrb.mxu0 %v487_v56  ;;  %1103 = vmatpush.msrb.mxu1 %v555_v57  ;;  %v591_v23 = vld [vmem:[#allocation7 + $0x4b8] sm:$0xff] }
 0x237   : > { %1124 = vmatpush.msrb.mxu2 %v615_v58  ;;  %1143 = vmatpush.msrb.mxu3 %v683_v59  ;;  %v659_v24 = vld [vmem:[#allocation7 + $0x6d8] sm:$0xff] }
 0x238   : > { %1085 = vmatpush.msrb.mxu0 %v483_v60  ;;  %1104 = vmatpush.msrb.mxu1 %v551_v61  ;;  %v459_v25 = vld [vmem:[#allocation7 + $0x98] sm:$0xff] }
 0x239   : > { %1125 = vmatpush.msrb.mxu2 %v611_v0  ;;  %1144 = vmatpush.msrb.mxu3 %v679_v1  ;;  %v527_v26 = vld [vmem:[#allocation7 + $0x2b8] sm:$0xff] }
 0x23a   : > { %1086 = vmatpush.msrb.mxu0 %v479_v4  ;;  %1105 = vmatpush.msrb.mxu1 %v547_v5  ;;  %v587_v27 = vld [vmem:[#allocation7 + $0x498] sm:$0xff] }
 0x23b   : > { %1126 = vmatpush.msrb.mxu2 %v607_v6  ;;  %1145 = vmatpush.msrb.mxu3 %v675_v7  ;;  %v655_v28 = vld [vmem:[#allocation7 + $0x6b8] sm:$0xff] }
 0x23c   : > { %1087 = vmatpush.msrb.mxu0 %v475_v8  ;;  %1106 = vmatpush.msrb.mxu1 %v543_v9  ;;  %v455_v29 = vld [vmem:[#allocation7 + $0x78] sm:$0xff] }
 0x23d   : > { %1127 = vmatpush.msrb.mxu2 %v603_v10  ;;  %1146 = vmatpush.msrb.mxu3 %v671_v11  ;;  %v523_v30 = vld [vmem:[#allocation7 + $0x298] sm:$0xff] }
 0x23e   : > { %1088 = vmatpush.msrb.mxu0 %v471_v12  ;;  %1107 = vmatpush.msrb.mxu1 %v539_v13  ;;  %v583_v31 = vld [vmem:[#allocation7 + $0x478] sm:$0xff] }
 0x23f   : > { %1128 = vmatpush.msrb.mxu2 %v599_v14  ;;  %1147 = vmatpush.msrb.mxu3 %v667_v15  ;;  %v651_v32 = vld [vmem:[#allocation7 + $0x698] sm:$0xff] }
 0x240   : > { %1089 = vmatpush.msrb.mxu0 %v467_v16  ;;  %1108 = vmatpush.msrb.mxu1 %v535_v17  ;;  %v451_v33 = vld [vmem:[#allocation7 + $0x58] sm:$0xff] }
 0x241   : > { %1129 = vmatpush.msrb.mxu2 %v595_v18  ;;  %1148 = vmatpush.msrb.mxu3 %v663_v19  ;;  %v519_v34 = vld [vmem:[#allocation7 + $0x278] sm:$0xff] }
 0x242   : > { %1090 = vmatpush.msrb.mxu0 %v463_v20  ;;  %1109 = vmatpush.msrb.mxu1 %v531_v21  ;;  %v579_v35 = vld [vmem:[#allocation7 + $0x458] sm:$0xff] }
 0x243   : > { %1130 = vmatpush.msrb.mxu2 %v591_v23  ;;  %1149 = vmatpush.msrb.mxu3 %v659_v24  ;;  %v647_v36 = vld [vmem:[#allocation7 + $0x678] sm:$0xff] }
 0x244   : > { %1091 = vmatpush.msrb.mxu0 %v459_v25  ;;  %1110 = vmatpush.msrb.mxu1 %v527_v26  ;;  %v447_v37 = vld [vmem:[#allocation7 + $0x38] sm:$0xff] }
 0x245   : > { %1131 = vmatpush.msrb.mxu2 %v587_v27  ;;  %1150 = vmatpush.msrb.mxu3 %v655_v28  ;;  %v515_v38 = vld [vmem:[#allocation7 + $0x258] sm:$0xff] }
 0x246   : > { %1092 = vmatpush.msrb.mxu0 %v455_v29  ;;  %1111 = vmatpush.msrb.mxu1 %v523_v30  ;;  %v575_v39 = vld [vmem:[#allocation7 + $0x438] sm:$0xff] }
 0x247   : > { %1132 = vmatpush.msrb.mxu2 %v583_v31  ;;  %1151 = vmatpush.msrb.mxu3 %v651_v32  ;;  %v643_v40 = vld [vmem:[#allocation7 + $0x658] sm:$0xff] }
 0x248   : > { %1093 = vmatpush.msrb.mxu0 %v451_v33  ;;  %1112 = vmatpush.msrb.mxu1 %v519_v34  ;;  %v443_v41 = vld [vmem:[#allocation7 + $0x18] sm:$0xff] }
 0x249   : > { %1133 = vmatpush.msrb.mxu2 %v579_v35  ;;  %1152 = vmatpush.msrb.mxu3 %v647_v36  ;;  %v511_v42 = vld [vmem:[#allocation7 + $0x238] sm:$0xff] }
 0x24a   : > { %1094 = vmatpush.msrb.mxu0 %v447_v37  ;;  %1113 = vmatpush.msrb.mxu1 %v515_v38  ;;  %v571_v43 = vld [vmem:[#allocation7 + $0x418] sm:$0xff] }
 0x24b   : > { %v639_v44 = vld [vmem:[#allocation7 + $0x638] sm:$0xff]  ;;  %1134 = vmatpush.msrb.mxu2 %v575_v39  ;;  %1153 = vmatpush.msrb.mxu3 %v643_v40 }
 0x24c   : > { %1095 = vmatpush.msrb.mxu0 %v443_v41  ;;  %1114 = vmatpush.msrb.mxu1 %v511_v42  ;;  %v507_v47 = vld [vmem:[#allocation7 + $0x218] sm:$0xff] }
 0x24d   : > { %v635_v48 = vld [vmem:[#allocation7 + $0x618] sm:$0xff]  ;;  %1135 = vmatpush.msrb.mxu2 %v571_v43  ;;  %1154 = vmatpush.msrb.mxu3 %v639_v44 }
 0x24e   : > { %1096 = vmatmul.f32.vlgmr.msrb.gmra.mxu0 %v1779_v45  ;;  %1136 = vmatmul.f32.vlgmr.msrb.gmra.mxu2 %v1783_v46 }
 0x24f   : > { %1115 = vmatpush.msrb.mxu1 %v507_v47  ;;  %1155 = vmatpush.msrb.mxu3 %v635_v48 }
 0x250   : > { %1116 = vmatmul.f32.vlgmr.msrb.gmra.mxu1 %v1787_v50  ;;  %1156 = vmatmul.f32.vlgmr.msrb.gmra.mxu3 %v1791_v2 }
 0x264   : > { %v777_v22 = vpop.f32.mrf.mxu0  ;;  %v797_v49 = vpop.f32.mrf.mxu1 }
 0x26b   : > { %v817_v62 = vpop.f32.mrf.mxu2  ;;  %v837_v52 = vpop.f32.mrf.mxu3 }
 0x26d   : > { %v857_v51 = vpop.f32.mrf.mxu0 }
 0x26e   : > { %v858_v53 = vadd.f32 %v857_v51, %v777_v22 }
 0x270   : > { %v877_v54 = vpop.f32.mrf.mxu1 }
 0x271   : > { %v878_v3 = vadd.f32 %v877_v54, %v858_v53 }
 0x273   : > { %v897_v63 = vpop.f32.mrf.mxu2 }
 0x274   : > { %v898_v55 = vadd.f32 %v897_v63, %v878_v3 }
 0x276   : > { %v917_v45 = vpop.f32.mrf.mxu3 }
 0x277   : > { %v918_v56 = vadd.f32 %v917_v45, %v898_v55 }
 0x279   : > { %1160 = vst [vmem:[%s1800_s23] sm:$0xff] %v918_v56 }
 0x287   : > { %v937_v46 = vpop.f32.mrf.mxu0 }
 0x288   : > { %v938_v50 = vadd.f32 %v937_v46, %v797_v49 }
 0x28a   : > { %v957_v2 = vpop.f32.mrf.mxu1 }
 0x28b   : > { %v958_v57 = vadd.f32 %v957_v2, %v938_v50 }
 0x28d   : > { %v977_v58 = vpop.f32.mrf.mxu2 }
 0x28e   : > { %v978_v59 = vadd.f32 %v977_v58, %v958_v57 }
 0x290   : > { %v997_v60 = vpop.f32.mrf.mxu3 }
 0x291   : > { %v998_v61 = vadd.f32 %v997_v60, %v978_v59 }
 0x293   : > { %1161 = vst [vmem:[%s1800_s23 + $0x8] sm:$0xff] %v998_v61 }
 0x2a9   : > { %v1017_v0 = vpop.f32.mrf.mxu0 }
 0x2aa   : > { %v1018_v1 = vadd.f32 %v1017_v0, %v817_v62 }
 0x2ac   : > { %v1037_v4 = vpop.f32.mrf.mxu1 }
 0x2ad   : > { %v1038_v5 = vadd.f32 %v1037_v4, %v1018_v1 }
 0x2af   : > { %v1057_v6 = vpop.f32.mrf.mxu2 }
 0x2b0   : > { %v1058_v7 = vadd.f32 %v1057_v6, %v1038_v5 }
 0x2b2   : > { %v1077_v8 = vpop.f32.mrf.mxu3 }
 0x2b3   : > { %v1078_v9 = vadd.f32 %v1077_v8, %v1058_v7 }
 0x2b5   : > { %1162 = vst [vmem:[%s1800_s23 + $0x10] sm:$0xff] %v1078_v9 }
 0x2cb   : > { %v1097_v10 = vpop.f32.mrf.mxu0 }
 0x2cc   : > { %v1098_v11 = vadd.f32 %v1097_v10, %v837_v52 }
 0x2cd   : > { %v1117_v12 = vpop.f32.mrf.mxu1 }
 0x2ce   : > { %v1118_v13 = vadd.f32 %v1117_v12, %v1098_v11 }
 0x2d1   : > { %v1137_v14 = vpop.f32.mrf.mxu2 }
 0x2d2   : > { %v1138_v15 = vadd.f32 %v1137_v14, %v1118_v13 }
 0x2d3   : > { %v1157_v16 = vpop.f32.mrf.mxu3 }
 0x2d4   : > { %v1158_v17 = vadd.f32 %v1157_v16, %v1138_v15 }
 0x2d6   : > { %1163 = vst [vmem:[%s1800_s23 + $0x18] sm:$0xff] %v1158_v17 }
 0x2d7   : > { %1538 = shalt.err (!%p1535_p9)
}
 0x2d8   : > { %1316 = dma.vmem_to_hbm [thread:$0]  (%p1695_p13), %s1179_s13, 512, %s1181_s14, %s1165_s19  }
 0x2d9 PF: > { %s1192_s28 = sand.u32 1, %s1573_s15   ;;  %p1851_p10 = scmp.ge.s32.totalorder %s1585_s18, 2 }
 0x2da   : > { %s1193_s8 = scalar_lea.sflag [#allocation4], %s1192_s28 }
 0x2db   : > { %p1333_p11 = pnand %p1851_p10, %p1700_p4 }
 0x2dd   : > { %p1334_p0 = pneg %p1333_p11 }
 0x2df   : > { %1568 = dma.done.wait (%p1334_p0), %s1193_s8, 512  }
 0x2e0   : > { %1570 = vsyncadd (%p1334_p0), %s1193_s8, 4294966784  ;;  %p19_p2 = scmp.ge.s32.totalorder %s1675_s20, 4   ;;  %s1852_s15 = smov %s1577_s16 }
 0x2e1   : > { %s1853_s16 = smov %s1581_s17  ;;  %s1854_s17 = smov %s1687_s25 }
 0x2e2   : > { %s1855_s18 = smov %s1675_s20  ;;  %21 = sbr.rel (!%p19_p2) target bundleno = 7 (0x7), region = 93 }
 0x2e7   :  { %1199 = vsyncpa [#allocation3], 1 }
 0x2e8   :  { %1201 = vsyncpa [#allocation3 + $0x1], 1 }
 0x2e9   :  { %1202 = vsyncpa [#allocation6], 1 }
 0x2ea   :  { %1203 = vsyncpa [#allocation9], 1 }
 0x2eb   :  { %1204 = vsyncpa [#allocation4], 1 }
 0x2ec   :  { %1206 = vsyncpa [#allocation4 + $0x1], 1 }

</bundles_post_ra>
